<compile_context>
chip_gen: v6e
topology: v6e:2x2x1
jax: 0.10.0
libtpu: 0.0.40
codegen_flags: <defaults>
</compile_context>

<pallas_src>
import functools
import math

import jax
import jax.numpy as jnp
from jax.experimental import pallas as pl
from jax.experimental.pallas import tpu as pltpu

LN_EPS = 1e-5          # nn.LayerNorm default
_NEG_INF = -1e30       # finite "masked" value (fully-masked rows -> uniform, not NaN)


def _cdiv(a, b):
    return (a + b - 1) // b


def _round_up(a, b):
    return _cdiv(a, b) * b


def _layer_norm(y, gamma, beta):
    mean = jnp.mean(y, axis=-1, keepdims=True)
    var = jnp.mean((y - mean) ** 2, axis=-1, keepdims=True)
    return (y - mean) * jax.lax.rsqrt(var + LN_EPS) * gamma + beta


def _pick_block_rows(n_rows, desired, base):
    """Large row tiles (amortize per-step overhead, fill MXU M), but keep the
    grid >= 2 steps when possible so both TensorCores get work (megacore/v7x)."""
    half = _round_up(max(_cdiv(n_rows, 2), base), base)
    return max(base, min(desired, half))


def _vmem_ceiling():
    """Derive the scoped-VMEM ceiling from the chip: ~3/4 of physical VMEM
    (48 MiB on v7x's 64 MiB, ~112 MiB on v5e/v6e's 128 MiB)."""
    try:
        cap = int(getattr(pltpu.get_tpu_info(), "vmem_capacity_bytes", 0))
    except Exception:
        cap = 0
    if cap <= 0:
        return 64 << 20
    return max((cap * 3) // 4, cap - (16 << 20))


def _compiler_params(semantics, vmem_bytes_est):
    limit = int(min(max(2 * int(vmem_bytes_est) + (4 << 20), 32 << 20),
                    _vmem_ceiling()))
    return pltpu.CompilerParams(dimension_semantics=semantics,
                                vmem_limit_bytes=limit)


def _attn_lane_target():
    """Target lane width for the attention-core blocks: 128 on v5e (128-wide
    MXU), 256 on v6e/v7x (256-wide MXU)."""
    try:
        kind = jax.devices()[0].device_kind.lower()
    except Exception:
        return 256
    return 128 if ("v5 lite" in kind or "v5e" in kind) else 256


def _pick_head_group(n_head, d_head, target):
    """Largest divisor of n_head whose lane width (hg*d_head) is a multiple of
    128 and <= target; otherwise all heads (caller falls back to full-dim blocks)."""
    best = None
    for hg in range(1, n_head + 1):
        if n_head % hg:
            continue
        w = hg * d_head
        if w % 128 == 0 and w <= max(target, d_head):
            best = hg
    return best if best is not None else n_head


# TODO(synk): resident-weight BlockSpecs would ideally be single-buffered via
# pipeline_mode=pl.Buffered(1); left on default buffering pending confirmation
# that top-level pallas_call honours pipeline_mode on this backend.
def _weight_spec(shape):
    return pl.BlockSpec(shape, lambda *idx: (0,) * len(shape))


# ---------------------------------------------------------------------------
# Kernel 1a: generic row-tiled projection (optional fused pre-LayerNorm)
# ---------------------------------------------------------------------------
def _proj_kernel(x_ref, w_ref, g_ref, b_ref, o_ref, *, apply_ln):
    x = x_ref[...]
    if apply_ln:
        x = _layer_norm(x.astype(jnp.float32),
                        g_ref[...].astype(jnp.float32),
                        b_ref[...].astype(jnp.float32)).astype(x_ref.dtype)
    o_ref[...] = jnp.dot(x, w_ref[...],
                         preferred_element_type=jnp.float32).astype(o_ref.dtype)


def _row_tiled_proj(x2d, w, gamma, beta, *, apply_ln, block_rows):
    n_rows, d_in = x2d.shape
    d_out = w.shape[1]
    base = 16 if x2d.dtype == jnp.bfloat16 else 8
    br = _pick_block_rows(n_rows, block_rows, base)
    n_pad = _round_up(n_rows, br)
    if n_pad != n_rows:
        x2d = jnp.pad(x2d, ((0, n_pad - n_rows), (0, 0)))

    bpe = x2d.dtype.itemsize
    vmem_est = (br * d_in + d_in * d_out + br * d_out) * max(bpe, 4) + 2 * d_in * 4
    out = pl.pallas_call(
        functools.partial(_proj_kernel, apply_ln=apply_ln),
        out_shape=jax.ShapeDtypeStruct((n_pad, d_out), x2d.dtype),
        grid_spec=pltpu.PrefetchScalarGridSpec(
            num_scalar_prefetch=0,
            grid=(n_pad // br,),
            in_specs=[
                pl.BlockSpec((br, d_in), lambda i: (i, 0)),   # x row tile
                _weight_spec((d_in, d_out)),                  # W (resident)
                _weight_spec((1, d_in)),                      # gamma
                _weight_spec((1, d_in)),                      # beta
            ],
            out_specs=pl.BlockSpec((br, d_out), lambda i: (i, 0)),
        ),
        compiler_params=_compiler_params(("parallel",), vmem_est),
        cost_estimate=pl.CostEstimate(
            flops=int(2 * n_pad * d_in * d_out),
            transcendentals=0,
            bytes_accessed=int((n_pad * d_in + d_in * d_out + n_pad * d_out) * bpe)),
    )(x2d, w, gamma.reshape(1, d_in), beta.reshape(1, d_in))
    return out[:n_rows]


# ---------------------------------------------------------------------------
# Kernel 1b: fused Q + KV projection (mems is None -> h read once)
# ---------------------------------------------------------------------------
def _qkv_fused_kernel(x_ref, wq_ref, wkv_ref, g_ref, b_ref, q_ref, kv_ref, *,
                      apply_ln):
    x = x_ref[...]
    # q_net always sees raw h (matches the PyTorch module)
    q_ref[...] = jnp.dot(x, wq_ref[...],
                         preferred_element_type=jnp.float32).astype(q_ref.dtype)
    xkv = x
    if apply_ln:
        xkv = _layer_norm(x.astype(jnp.float32),
                          g_ref[...].astype(jnp.float32),
                          b_ref[...].astype(jnp.float32)).astype(x_ref.dtype)
    kv_ref[...] = jnp.dot(xkv, wkv_ref[...],
                          preferred_element_type=jnp.float32).astype(kv_ref.dtype)


def _fused_qkv_proj(x2d, wq, wkv, gamma, beta, *, apply_ln, block_rows):
    n_rows, d_in = x2d.shape
    h_out, kv_out = wq.shape[1], wkv.shape[1]
    base = 16 if x2d.dtype == jnp.bfloat16 else 8
    br = _pick_block_rows(n_rows, block_rows, base)
    n_pad = _round_up(n_rows, br)
    if n_pad != n_rows:
        x2d = jnp.pad(x2d, ((0, n_pad - n_rows), (0, 0)))

    bpe = x2d.dtype.itemsize
    vmem_est = (br * d_in + d_in * (h_out + kv_out)
                + br * (h_out + kv_out)) * max(bpe, 4) + 2 * d_in * 4
    q, kv = pl.pallas_call(
        functools.partial(_qkv_fused_kernel, apply_ln=apply_ln),
        out_shape=(jax.ShapeDtypeStruct((n_pad, h_out), x2d.dtype),
                   jax.ShapeDtypeStruct((n_pad, kv_out), x2d.dtype)),
        grid_spec=pltpu.PrefetchScalarGridSpec(
            num_scalar_prefetch=0,
            grid=(n_pad // br,),
            in_specs=[
                pl.BlockSpec((br, d_in), lambda i: (i, 0)),   # h row tile (read once)
                _weight_spec((d_in, h_out)),                  # Wq*scale (resident)
                _weight_spec((d_in, kv_out)),                 # Wkv (resident)
                _weight_spec((1, d_in)),                      # gamma
                _weight_spec((1, d_in)),                      # beta
            ],
            out_specs=[pl.BlockSpec((br, h_out), lambda i: (i, 0)),
                       pl.BlockSpec((br, kv_out), lambda i: (i, 0))],
        ),
        compiler_params=_compiler_params(("parallel",), vmem_est),
        cost_estimate=pl.CostEstimate(
            flops=int(2 * n_pad * d_in * (h_out + kv_out)),
            transcendentals=0,
            bytes_accessed=int((n_pad * (d_in + h_out + kv_out)
                                + d_in * (h_out + kv_out)) * bpe)),
    )(x2d, wq, wkv, gamma.reshape(1, d_in), beta.reshape(1, d_in))
    return q[:n_rows], kv[:n_rows]


# ---------------------------------------------------------------------------
# Kernel 2: attention core, one (batch, head-group) per grid step
# ---------------------------------------------------------------------------
def _attn_kernel(*refs, dh, hg, has_mask):
    if has_mask:
        q_ref, k_ref, v_ref, m_ref, o_ref = refs
    else:
        q_ref, k_ref, v_ref, o_ref = refs
    q = q_ref[...]                                # (qlen, hg*dh), scale folded into Wq
    k = k_ref[...]                                # (klen, hg*dh)
    v = v_ref[...]                                # (klen, hg*dh)
    if has_mask:
        masked = m_ref[...] != 0                  # (qm, klen) bool, qm in {1, qlen}

    outs = []
    for n in range(hg):                           # static unroll over heads in group
        sl = slice(n * dh, (n + 1) * dh)
        s = jax.lax.dot_general(q[:, sl], k[:, sl], (((1,), (1,)), ((), ())),
                                preferred_element_type=jnp.float32)
        if has_mask:
            s = jnp.where(masked, _NEG_INF, s)
        s_max = jnp.max(s, axis=-1, keepdims=True)
        p = jnp.exp(s - s_max)                    # f32 softmax math (v5e-safe)
        denom = jnp.sum(p, axis=-1, keepdims=True)
        o = jax.lax.dot_general(p.astype(v.dtype), v[:, sl],
                                (((1,), (0,)), ((), ())),
                                preferred_element_type=jnp.float32)
        # deferred normalization: qlen*dh multiplies instead of qlen*klen divides
        outs.append(o * pl.reciprocal(denom, approx=False))
    o_full = outs[0] if hg == 1 else jnp.concatenate(outs, axis=-1)
    o_ref[...] = o_full.astype(o_ref.dtype)       # lane-dense (128/256-wide) store


def _attention_core(q3, kv3, mask, *, n_head, d_head):
    # q3: (bsz, qlen, H);  kv3: (bsz, klen, 2H);  mask: None | int8 (bsz, qm, klen)
    bsz, qlen, H = q3.shape
    klen = kv3.shape[1]
    assert H == n_head * d_head

    hg = _pick_head_group(n_head, d_head, _attn_lane_target())
    Hg = hg * d_head
    n_groups = n_head // hg
    combined = (Hg % 128 == 0)     # read K/V straight out of the combined KV array

    q_spec = pl.BlockSpec((None, qlen, Hg), lambda b, g: (b, 0, g))
    if combined:
        k_arr, v_arr = kv3, kv3
        k_spec = pl.BlockSpec((None, klen, Hg), lambda b, g: (b, 0, g))
        v_spec = pl.BlockSpec((None, klen, Hg), lambda b, g: (b, 0, n_groups + g))
    else:
        # Fallback for head widths not a multiple of 128 lanes: split host-side
        # so block last dims equal the full array dims (n_groups == 1 here).
        k_arr, v_arr = kv3[..., :H], kv3[..., H:]
        k_spec = pl.BlockSpec((None, klen, Hg), lambda b, g: (b, 0, g))
        v_spec = pl.BlockSpec((None, klen, Hg), lambda b, g: (b, 0, g))

    in_specs = [q_spec, k_spec, v_spec]
    args = [q3, k_arr, v_arr]
    has_mask = mask is not None
    if has_mask:
        qm = mask.shape[1]
        in_specs.append(pl.BlockSpec((None, qm, klen), lambda b, g: (b, 0, 0)))
        args.append(mask)

    bpe = q3.dtype.itemsize
    vmem_est = ((2 * qlen + 2 * klen) * Hg * bpe + 3 * qlen * klen * 4
                + (qlen * klen if has_mask else 0))
    # TODO(synk): for very long klen (especially v7x's 64 MiB VMEM) a kv-tiled
    # online-softmax (flash-style) core is needed; whole-klen blocks are fine at
    # Transformer-XL memory lengths.
    out = pl.pallas_call(
        functools.partial(_attn_kernel, dh=d_head, hg=hg, has_mask=has_mask),
        out_shape=jax.ShapeDtypeStruct((bsz, qlen, H), q3.dtype),
        grid_spec=pltpu.PrefetchScalarGridSpec(
            num_scalar_prefetch=0,
            grid=(bsz, n_groups),          # bsz leading & parallel; >=2 steps for 2-TC chips
            in_specs=in_specs,
            out_specs=pl.BlockSpec((None, qlen, Hg), lambda b, g: (b, 0, g)),
        ),
        compiler_params=_compiler_params(("parallel", "parallel"), vmem_est),
        cost_estimate=pl.CostEstimate(
            flops=int(4 * bsz * n_head * qlen * klen * d_head),
            transcendentals=int(bsz * n_head * qlen * klen),
            bytes_accessed=int(bsz * (2 * qlen + 2 * klen) * H * bpe
                               + (bsz * qlen * klen if has_mask else 0))),
    )(*args)
    return out


# ---------------------------------------------------------------------------
# Kernel 3: output projection + residual + (post-)LayerNorm
# ---------------------------------------------------------------------------
def _out_kernel(v_ref, h_ref, w_ref, g_ref, b_ref, o_ref, *, pre_lnorm):
    y = h_ref[...].astype(jnp.float32) + jnp.dot(
        v_ref[...], w_ref[...], preferred_element_type=jnp.float32)
    if not pre_lnorm:
        y = _layer_norm(y, g_ref[...].astype(jnp.float32),
                        b_ref[...].astype(jnp.float32))
    o_ref[...] = y.astype(o_ref.dtype)


def _row_tiled_out(vec2d, h2d, wo, gamma, beta, *, pre_lnorm, block_rows):
    n_rows, d_in = vec2d.shape
    d_out = wo.shape[1]
    base = 16 if vec2d.dtype == jnp.bfloat16 else 8
    br = _pick_block_rows(n_rows, block_rows, base)
    n_pad = _round_up(n_rows, br)
    if n_pad != n_rows:
        vec2d = jnp.pad(vec2d, ((0, n_pad - n_rows), (0, 0)))
        h2d = jnp.pad(h2d, ((0, n_pad - n_rows), (0, 0)))

    bpe = vec2d.dtype.itemsize
    vmem_est = (br * d_in + 2 * br * d_out + d_in * d_out) * max(bpe, 4)
    out = pl.pallas_call(
        functools.partial(_out_kernel, pre_lnorm=pre_lnorm),
        out_shape=jax.ShapeDtypeStruct((n_pad, d_out), h2d.dtype),
        grid_spec=pltpu.PrefetchScalarGridSpec(
            num_scalar_prefetch=0,
            grid=(n_pad // br,),
            in_specs=[
                pl.BlockSpec((br, d_in), lambda i: (i, 0)),    # attn_vec tile
                pl.BlockSpec((br, d_out), lambda i: (i, 0)),   # residual h tile
                _weight_spec((d_in, d_out)),                   # Wo (resident)
                _weight_spec((1, d_out)),                      # gamma
                _weight_spec((1, d_out)),                      # beta
            ],
            out_specs=pl.BlockSpec((br, d_out), lambda i: (i, 0)),
        ),
        compiler_params=_compiler_params(("parallel",), vmem_est),
        cost_estimate=pl.CostEstimate(
            flops=int(2 * n_pad * d_in * d_out),
            transcendentals=0,
            bytes_accessed=int((n_pad * (d_in + 2 * d_out) + d_in * d_out) * bpe)),
    )(vec2d, h2d, wo, gamma.reshape(1, d_out), beta.reshape(1, d_out))
    return out[:n_rows]


# ---------------------------------------------------------------------------
# Full module forward
# ---------------------------------------------------------------------------
def multi_head_attn(h, params, *, n_head, d_head, pre_lnorm=False,
                    attn_mask=None, mems=None, block_rows=512):
    """h: (qlen, batch, d_model) -> (qlen, batch, d_model)."""
    wq, wkv, wo, gamma, beta = params
    qlen, bsz, d_model = h.shape
    H = n_head * d_head
    assert wq.shape == (d_model, H)
    assert wkv.shape == (d_model, 2 * H)
    assert wo.shape == (H, d_model)

    # Fold 1/sqrt(d_head) into Wq (weight-sized, one-off) so the attention core
    # never scales the (qlen, klen) score matrix.
    wq_s = wq * jnp.asarray(1.0 / math.sqrt(d_head), wq.dtype)

    # Batch-major activations: one transpose of h (and mems) up-front; all later
    # stages read/write projection-native (rows, feature) slabs with no Q/K/V/
    # attn_vec transposes or k/v split copies in between.
    hb = jnp.transpose(h, (1, 0, 2))                       # (bsz, qlen, d_model)
    hb2d = hb.reshape(bsz * qlen, d_model)

    if mems is not None and mems.shape[0] > 0:
        memsb = jnp.transpose(mems.astype(h.dtype), (1, 0, 2))
        cb = jnp.concatenate([memsb, hb], axis=1)          # (bsz, klen, d_model)
        klen = cb.shape[1]
        q2d = _row_tiled_proj(hb2d, wq_s, gamma, beta,
                              apply_ln=False, block_rows=block_rows)
        kv2d = _row_tiled_proj(cb.reshape(bsz * klen, d_model), wkv, gamma, beta,
                               apply_ln=pre_lnorm, block_rows=block_rows)
    else:
        klen = qlen
        q2d, kv2d = _fused_qkv_proj(hb2d, wq_s, wkv, gamma, beta,
                                    apply_ln=pre_lnorm, block_rows=block_rows)

    q3 = q2d.reshape(bsz, qlen, H)                         # free views (batch-major rows)
    kv3 = kv2d.reshape(bsz, klen, 2 * H)

    # Mask as int8 (no f32 bias materialization); kernel applies jnp.where.
    mask = None
    if attn_mask is not None:
        if attn_mask.ndim == 2:        # torch: (klen, bsz), broadcast over queries
            mask = jnp.transpose(attn_mask, (1, 0)).astype(jnp.int8)[:, None, :]
        elif attn_mask.ndim == 3:      # torch: (qlen, klen, bsz)
            mask = jnp.transpose(attn_mask, (2, 0, 1)).astype(jnp.int8)
        else:
            raise ValueError("attn_mask must be 2-D or 3-D")
        # TODO(synk): torch's data-dependent `attn_mask.any().item()` short-circuit
        # is not traceable; an all-False mask gives identical results anyway.

    attn_vec3 = _attention_core(q3, kv3, mask, n_head=n_head, d_head=d_head)

    out2d = _row_tiled_out(attn_vec3.reshape(bsz * qlen, H), hb2d, wo, gamma, beta,
                           pre_lnorm=pre_lnorm, block_rows=block_rows)
    return jnp.transpose(out2d.reshape(bsz, qlen, d_model), (1, 0, 2))


# ---------------------------------------------------------------------------
# Params, pure-JAX reference, self-test
# ---------------------------------------------------------------------------
def init_params(key, d_model, n_head, d_head, dtype=jnp.float32):
    kq, kkv, ko = jax.random.split(key, 3)
    H = n_head * d_head
    lim = 1.0 / math.sqrt(d_model)
    lim_o = 1.0 / math.sqrt(H)
    wq = jax.random.uniform(kq, (d_model, H), dtype, -lim, lim)
    wkv = jax.random.uniform(kkv, (d_model, 2 * H), dtype, -lim, lim)
    wo = jax.random.uniform(ko, (H, d_model), dtype, -lim_o, lim_o)
    gamma = jnp.ones((d_model,), dtype)
    beta = jnp.zeros((d_model,), dtype)
    return (wq, wkv, wo, gamma, beta)


def reference_mha(h, params, *, n_head, d_head, pre_lnorm=False,
                  attn_mask=None, mems=None):
    wq, wkv, wo, gamma, beta = params
    qlen, bsz, d_model = h.shape
    H = n_head * d_head
    c = jnp.concatenate([mems, h], axis=0) if mems is not None else h
    klen = c.shape[0]
    cc = _layer_norm(c, gamma, beta) if pre_lnorm else c
    head_q = (h @ wq).reshape(qlen, bsz, n_head, d_head)
    kv = cc @ wkv
    head_k = kv[..., :H].reshape(klen, bsz, n_head, d_head)
    head_v = kv[..., H:].reshape(klen, bsz, n_head, d_head)
    score = jnp.einsum('ibnd,jbnd->ijbn', head_q, head_k) / math.sqrt(d_head)
    if attn_mask is not None:
        if attn_mask.ndim == 2:
            score = jnp.where(attn_mask[None, :, :, None], _NEG_INF, score)
        else:
            score = jnp.where(attn_mask[:, :, :, None], _NEG_INF, score)
    prob = jax.nn.softmax(score, axis=1)
    vec = jnp.einsum('ijbn,jbnd->ibnd', prob, head_v).reshape(qlen, bsz, H)
    attn_out = vec @ wo
    if pre_lnorm:
        return h + attn_out
    return _layer_norm(h + attn_out, gamma, beta)


if __name__ == "__main__":
    jax.config.update("jax_default_matmul_precision", "highest")

    n_head, d_head, d_model = 2, 64, 128          # n_head*d_head = 128 (lane-dense)
    qlen, bsz, mlen = 8, 2, 8

    key = jax.random.PRNGKey(0)
    k_h, k_m, k_p = jax.random.split(key, 3)
    h = jax.random.normal(k_h, (qlen, bsz, d_model), jnp.float32)
    mems = jax.random.normal(k_m, (mlen, bsz, d_model), jnp.float32)
    params = init_params(k_p, d_model, n_head, d_head)

    causal = jnp.arange(qlen)[:, None] < jnp.arange(qlen)[None, :]
    causal3 = jnp.broadcast_to(causal[:, :, None], (qlen, qlen, bsz))
    # 2-D torch mask (klen, bsz): last two keys masked for every query
    mask2 = jnp.broadcast_to((jnp.arange(qlen) >= qlen - 2)[:, None], (qlen, bsz))

    cases = [
        dict(pre_lnorm=False, attn_mask=None, mems=None),
        dict(pre_lnorm=True, attn_mask=None, mems=None),
        dict(pre_lnorm=False, attn_mask=causal3, mems=None),
        dict(pre_lnorm=False, attn_mask=mask2, mems=None),
        dict(pre_lnorm=True, attn_mask=None, mems=mems),
    ]
    for idx, cfg in enumerate(cases):
        out = jax.block_until_ready(
            multi_head_attn(h, params, n_head=n_head, d_head=d_head, **cfg))
        ref = reference_mha(h, params, n_head=n_head, d_head=d_head, **cfg)
        assert out.shape == h.shape
        # 5e-4: scale folded into Wq + deferred softmax normalization reorder fp ops
        assert jnp.allclose(out, ref, atol=5e-4, rtol=5e-4), \
            f"mismatch for case {idx} (pre_lnorm={cfg['pre_lnorm']})"
    print("KERNEL_OK")
</pallas_src>

<mosaic_0001>
module attributes {stable_mosaic.version = 11 : i64} {
  func.func @_qkv_fused_kernel(%arg0: i32, %arg1: memref<8x128xf32, #tpu.memory_space<vmem>>, %arg2: memref<128x128xf32, #tpu.memory_space<vmem>>, %arg3: memref<128x256xf32, #tpu.memory_space<vmem>>, %arg4: memref<1x128xf32, #tpu.memory_space<vmem>>, %arg5: memref<1x128xf32, #tpu.memory_space<vmem>>, %arg6: memref<8x128xf32, #tpu.memory_space<vmem>>, %arg7: memref<8x256xf32, #tpu.memory_space<vmem>>) attributes {dimension_semantics = [#tpu.dimension_semantics<parallel>], iteration_bounds = array<i64: 2>, scalar_prefetch = 0 : i64, scratch_operands = 0 : i64, tpu.core_type = #tpu.core_type<tc>, window_params = [{transform_indices = @transform_0, window_bounds = array<i64: 8, 128>}, {pipeline_mode = #tpu.pipeline_mode<synchronous>, transform_indices = @transform_1, window_bounds = array<i64: 128, 128>}, {pipeline_mode = #tpu.pipeline_mode<synchronous>, transform_indices = @transform_2, window_bounds = array<i64: 128, 256>}, {pipeline_mode = #tpu.pipeline_mode<synchronous>, transform_indices = @transform_3, window_bounds = array<i64: 1, 128>}, {pipeline_mode = #tpu.pipeline_mode<synchronous>, transform_indices = @transform_4, window_bounds = array<i64: 1, 128>}, {transform_indices = @transform_5, window_bounds = array<i64: 8, 128>}, {transform_indices = @transform_6, window_bounds = array<i64: 8, 256>}]} {
    %c0 = arith.constant 0 : index
    %c0_0 = arith.constant 0 : index
    %0 = vector.load %arg1[%c0, %c0_0] : memref<8x128xf32, #tpu.memory_space<vmem>>, vector<8x128xf32>
    %c0_1 = arith.constant 0 : index
    %c0_2 = arith.constant 0 : index
    %1 = vector.load %arg2[%c0_1, %c0_2] : memref<128x128xf32, #tpu.memory_space<vmem>>, vector<128x128xf32>
    %cst = arith.constant dense<0.000000e+00> : vector<8x128xf32>
    %2 = tpu.matmul %0, %1, %cst {dimension_numbers = #tpu.dot_dimension_numbers<[1], [0], [0], [1], [0, 0, 1, 1], [], []>, precision = #tpu.contract_precision<fp32>} : vector<8x128xf32>, vector<128x128xf32>, vector<8x128xf32> -> vector<8x128xf32>
    %c0_3 = arith.constant 0 : index
    %c0_4 = arith.constant 0 : index
    %3 = vector.load %arg6[%c0_3, %c0_4] : memref<8x128xf32, #tpu.memory_space<vmem>>, vector<8x128xf32>
    tpu.vector_store %arg6[%c0_3, %c0_4], %2 {strides = array<i32>} : memref<8x128xf32, #tpu.memory_space<vmem>>, vector<8x128xf32>,
    %c0_5 = arith.constant 0 : index
    %c0_6 = arith.constant 0 : index
    %4 = vector.load %arg3[%c0_5, %c0_6] : memref<128x256xf32, #tpu.memory_space<vmem>>, vector<128x256xf32>
    %cst_7 = arith.constant dense<0.000000e+00> : vector<8x256xf32>
    %5 = tpu.matmul %0, %4, %cst_7 {dimension_numbers = #tpu.dot_dimension_numbers<[1], [0], [0], [1], [0, 0, 1, 1], [], []>, precision = #tpu.contract_precision<fp32>} : vector<8x128xf32>, vector<128x256xf32>, vector<8x256xf32> -> vector<8x256xf32>
    %c0_8 = arith.constant 0 : index
    %c0_9 = arith.constant 0 : index
    %6 = vector.load %arg7[%c0_8, %c0_9] : memref<8x256xf32, #tpu.memory_space<vmem>>, vector<8x256xf32>
    tpu.vector_store %arg7[%c0_8, %c0_9], %5 {strides = array<i32>} : memref<8x256xf32, #tpu.memory_space<vmem>>, vector<8x256xf32>,
    return
  }
  func.func @transform_0(%arg0: i32) -> (i32, i32) {
    %c0_i32 = arith.constant 0 : i32
    %c0_i32_0 = arith.constant 0 : i32
    return %arg0, %c0_i32 : i32, i32
  }
  func.func @transform_1(%arg0: i32) -> (i32, i32) {
    %c0_i32 = arith.constant 0 : i32
    %c0_i32_0 = arith.constant 0 : i32
    %c0_i32_1 = arith.constant 0 : i32
    return %c0_i32, %c0_i32_0 : i32, i32
  }
  func.func @transform_2(%arg0: i32) -> (i32, i32) {
    %c0_i32 = arith.constant 0 : i32
    %c0_i32_0 = arith.constant 0 : i32
    %c0_i32_1 = arith.constant 0 : i32
    return %c0_i32, %c0_i32_0 : i32, i32
  }
  func.func @transform_3(%arg0: i32) -> (i32, i32) {
    %c0_i32 = arith.constant 0 : i32
    %c0_i32_0 = arith.constant 0 : i32
    %c0_i32_1 = arith.constant 0 : i32
    return %c0_i32, %c0_i32_0 : i32, i32
  }
  func.func @transform_4(%arg0: i32) -> (i32, i32) {
    %c0_i32 = arith.constant 0 : i32
    %c0_i32_0 = arith.constant 0 : i32
    %c0_i32_1 = arith.constant 0 : i32
    return %c0_i32, %c0_i32_0 : i32, i32
  }
  func.func @transform_5(%arg0: i32) -> (i32, i32) {
    %c0_i32 = arith.constant 0 : i32
    %c0_i32_0 = arith.constant 0 : i32
    return %arg0, %c0_i32 : i32, i32
  }
  func.func @transform_6(%arg0: i32) -> (i32, i32) {
    %c0_i32 = arith.constant 0 : i32
    %c0_i32_0 = arith.constant 0 : i32
    return %arg0, %c0_i32 : i32, i32
  }
}

</mosaic_0001>

<bundles_post_ra>
// kernel: tpu_custom_call.1
= control target key start
LH: loop header
LB: loop body
LE: loop exit
PB: predicated region body
PF: predicated region fallthrough
CT: control target
= control target key end

     0   :  { %12 = vsyncpa [#allocation3], 0  ;;  %s3749_s0 = inlined_call_operand.hbm [shape: f32[16,128], index: 0, kind: input, shape index: {}]   ;;  %s3750_s1 = inlined_call_operand.hbm [shape: f32[128,128], index: 1, kind: input, shape index: {}]   ;;  %s3751_s2 = inlined_call_operand.hbm [shape: f32[128,256], index: 2, kind: input, shape index: {}]   ;;  %s3752_s3 = inlined_call_operand.vmem [shape: f32[1,128], index: 3, kind: input, shape index: {}]   ;;  %s3753_s4 = inlined_call_operand.vmem [shape: f32[1,128], index: 4, kind: input, shape index: {}]   ;;  %s3754_s5 = inlined_call_operand.hbm [shape: f32[16,128], index: 5, kind: output, shape index: {0}]   ;;  %s3755_s6 = inlined_call_operand.hbm [shape: f32[16,256], index: 6, kind: output, shape index: {1}]  }
   0x1   :  { %14 = vsyncpa [#allocation3 + $0x1], 0 }
   0x2   :  { %15 = vsyncpa [#allocation6], 0 }
   0x3   :  { %16 = vsyncpa [#allocation4], 0 }
   0x4   :  { %18 = vsyncpa [#allocation4 + $0x1], 0 }
   0x5   :  { %19 = vsyncpa [#allocation10], 0 }
   0x6   :  { %21 = vsyncpa [#allocation10 + $0x1], 0  ;;  %s2646_s21 = smov 0   ;;  %s2648_s22 = smov 0  }
   0x7   :  { %s2650_s3 = smov 0   ;;  %s2652_s4 = smov 0  }
   0x8 LB: > { %s2667_s23 = sadd.s32 4294967295, %s2598_s4   ;;  %s2009_s24 = sadd.s32 4294967294, %s2598_s4   ;;  %s2598_s4 = sphi %s2652_s4, %s3944_s4   ;;  %s2594_s3 = sphi %s2650_s3, %s3943_s3   ;;  %s2590_s22 = sphi %s2648_s22, %s3942_s22   ;;  %s2586_s21 = sphi %s2646_s21, %s3941_s21  }
   0x9   : > { %p47_p0 = scmp.ne.s32.totalorder %s2590_s22, %s2586_s21  ;;  %p3756_p1 = scmp.eq.s32.totalorder %s2667_s23, 0 }
   0xa   : > { %p161_p3 = scmp.eq.s32.totalorder %s2009_s24, 1  ;;  %p2010_p5 = scmp.ge.s32.totalorder %s2598_s4, 1 }
   0xb   : > { %p2676_p4 = por %p3756_p1, %p47_p0  ;;  %p194_p7 = scmp.lt.s32.totalorder %s2598_s4, 3 }
   0xc   : > { %p2681_p6 = por %p161_p3, %p47_p0  ;;  %s2600_s28 = smov [#allocation5]  }
   0xd   : > { %s3821_s25 = scalar_select %p2676_p4, 1, 0 }
   0xe   : > { %s3822_s26 = scalar_select %p2681_p6, 1, 0 }
   0xf   : > { %p2686_p8 = pnand %p2010_p5, %p194_p7  ;;  %s206_s29 = sshll.u32 %s2600_s28, 4  ;;  %s207_s29 = int_to_ptr.vmem [resolvable:$true] %s206_s29 }
  0x10   : > { %s2601_s7 = smov [#allocation7]   ;;  %s2431_s9 = scalar_lea.vmem %s207_s29, 2048 }
  0x11   : > { %s3823_s27 = scalar_select %p2686_p8, 1, 0 }
  0x12   : > { %p2356_p9 = pneg %p2686_p8  ;;  %s219_s8 = sshll.u32 %s2601_s7, 4  ;;  %s220_s8 = int_to_ptr.vmem [resolvable:$true] %s219_s8 }
  0x13   : > { %p2432_p13 = scmp.ne.s32.totalorder %s207_s29, %s2431_s9  ;;  %p2439_p5 = scmp.lt.s32.totalorder %s207_s29, %s207_s29 }
  0x14   : > { %p2695_p11 = pnand %p2356_p9, %p3756_p1  ;;  %p2440_p7 = scmp.lt.s32.totalorder %s2431_s9, %s2431_s9 }
  0x16   : > { %p2422_p12 = pneg %p2695_p11  ;;  %p2441_p10 = por %p2440_p7, %p2439_p5 }
  0x18   : > { %p2434_p0 = pnand %p2432_p13, %p2422_p12 }
  0x1a   : > { %p2435_p3 = pneg %p2434_p0 }
  0x1c   : > { %p2442_p9 = pnand %p2441_p10, %p2435_p3 }
  0x1e   : > { %2445 = shalt.err (!%p2442_p9)
}
  0x1f   : > { %s2602_s10 = smov 128   ;;  %s2603_s11 = smov 8  }
  0x20   : > { %2359 = dma.hbm_to_vmem [thread:$0]  (!%p2695_p11), %s3750_s1, 2048, %s207_s29, [#allocation6], %s2602_s10, %s2602_s10, %s2603_s11  }
  0x21   : > { %s2457_s14 = scalar_lea.vmem %s220_s8, 4096  ;;  %p2465_p2 = scmp.lt.s32.totalorder %s220_s8, %s220_s8 }
  0x22   : > { %p2458_p1 = scmp.ne.s32.totalorder %s220_s8, %s2457_s14  ;;  %p2466_p6 = scmp.lt.s32.totalorder %s2457_s14, %s2457_s14 }
  0x24   : > { %p2460_p13 = pnand %p2458_p1, %p2422_p12  ;;  %p2467_p5 = por %p2466_p6, %p2465_p2 }
  0x26   : > { %p2461_p0 = pneg %p2460_p13 }
  0x28   : > { %p2468_p10 = pnand %p2467_p5, %p2461_p0 }
  0x2a   : > { %2471 = shalt.err (!%p2468_p10)
}
  0x2b   : > { %s2604_s15 = smov 256   ;;  %s2605_s16 = smov 16  }
  0x2c   : > { %2362 = dma.hbm_to_vmem [thread:$0]  (!%p2695_p11), %s3751_s2, 4096, %s220_s8, [#allocation6], %s2604_s15, %s2604_s15, %s2605_s16  }
  0x2d   : > { %s2718_s19 = sadd.s32 1, %s2598_s4   ;;  %s34_s24 = sadd.s32 1, %s2594_s3 }
  0x2e   : > { %s31_s20 = ssub.s32 %s2598_s4, %s2718_s19  ;;  %p41_p2 = scmp.ne.s32.totalorder %s2594_s3, %s2590_s22 }
  0x2f   : > { %p32_p1 = scmp.eq.s32.totalorder %s31_s20, 0  ;;  %p42_p6 = scmp.eq.s32.totalorder %s2598_s4, 0 }
  0x30   : > { %p3825_p3 = scmp.eq.s32.totalorder %s2667_s23, 1  ;;  %p2376_p9 = scmp.lt.s32.totalorder %s2598_s4, 2 }
  0x31   : > { %s2727_s28 = scalar_select %p32_p1, %s2594_s3, %s34_s24  }
  0x32   : > { %p43_p12 = por %p42_p6, %p41_p2  ;;  %p2731_p7 = por %p3825_p3, %p41_p2 }
  0x33   : > { %s239_s30 = sand.u32 1, %s2594_s3   ;;  %s2015_s8 = sshll.u32 %s2598_s4, 7 }
  0x34   : > { %s3826_s29 = scalar_select %p2731_p7, 1, 0 }
  0x35   : > { %s2014_s7 = sshll.u32 %s239_s30, 3  ;;  %s2741_s11 = scalar_lea.hbm %s3749_s0, %s2015_s8 }
  0x36   : > { %s243_s12 = scalar_lea.vmem [#allocation2], %s2014_s7  ;;  %p2743_p11 = pnand %p2376_p9, %p43_p12 }
  0x37   : > { %s250_s13 = sshll.u32 %s243_s12, 4  ;;  %s240_s15 = scalar_lea.sflag [#allocation3], %s239_s30  ;;  %s251_s13 = int_to_ptr.vmem [resolvable:$true] %s250_s13 }
  0x38   : > { %s2472_s16 = scalar_lea.hbm %s2741_s11, 128  ;;  %p2474_p0 = pneg %p2743_p11 }
  0x39   : > { %p2473_p13 = scmp.ne.s32.totalorder %s2741_s11, %s2472_s16  ;;  %s2477_s20 = scalar_lea.hbm %s3749_s0, 256 }
  0x3a   : > { %p2478_p1 = scmp.lt.s32.totalorder %s2741_s11, %s3749_s0  ;;  %p2479_p2 = scmp.lt.s32.totalorder %s2477_s20, %s2472_s16 }
  0x3b   : > { %p2475_p5 = pnand %p2474_p0, %p2473_p13 }
  0x3c   : > { %p2480_p6 = por %p2479_p2, %p2478_p1 }
  0x3d   : > { %p2476_p10 = pneg %p2475_p5 }
  0x3f   : > { %p2481_p12 = pnand %p2480_p6, %p2476_p10 }
  0x41   : > { %2484 = shalt.err (!%p2481_p12)
}
  0x42   : > { %s2485_s8 = scalar_lea.vmem %s251_s13, 128  ;;  %s2606_s30 = smov [#allocation2]  }
  0x43   : > { %p2486_p3 = scmp.ne.s32.totalorder %s251_s13, %s2485_s8  ;;  %s2490_s9 = sshll.u32 %s2606_s30, 4  ;;  %s2491_s9 = int_to_ptr.vmem [resolvable:$false] %s2490_s9 }
  0x44   : > { %s2492_s10 = scalar_lea.vmem %s2491_s9, 256  ;;  %p2493_p13 = scmp.lt.s32.totalorder %s251_s13, %s2491_s9 }
  0x45   : > { %p2488_p9 = pnand %p2486_p3, %p2474_p0  ;;  %p2494_p5 = scmp.lt.s32.totalorder %s2492_s10, %s2485_s8 }
  0x47   : > { %p2489_p7 = pneg %p2488_p9  ;;  %p2495_p4 = por %p2494_p5, %p2493_p13 }
  0x49   : > { %p2496_p8 = pnand %p2495_p4, %p2489_p7 }
  0x4b   : > { %2499 = shalt.err (!%p2496_p8)
}
  0x4c   : > { %2366 = dma.hbm_to_vmem [thread:$0]  (!%p2743_p11), %s2741_s11, 128, %s251_s13, %s240_s15  }
  0x4d   : > { %p3828_p10 = scmp.ne.s32.totalorder %s3823_s27, 0 }
  0x4f   : > { %259 = sbr.rel (%p3828_p10) target bundleno = 513 (0x201), region = 40 }
  0x54   : > { %s2764_s12 = sand.u32 1, %s2590_s22   ;;  %p3829_p4 = scmp.ne.s32.totalorder %s3821_s25, 0 }
  0x55   : > { %s2017_s16 = sshll.u32 %s2764_s12, 3  ;;  %s262_s17 = scalar_lea.sflag [#allocation3], %s2764_s12 }
  0x56   : > { %s2770_s18 = scalar_lea.vmem [#allocation2], %s2017_s16 }
  0x57   : > { %2569 = dma.done.wait (%p3829_p4), %s262_s17, 128  }
  0x58   : > { %2571 = vsyncadd (%p3829_p4), %s262_s17, 4294967168  ;;  %p3830_p8 = scmp.eq.s32.totalorder %s2667_s23, 0 }
  0x5a   : > { %2573 = dma.done.wait (%p3830_p8), [#allocation6], 6144   ;;  %p3831_p7 = pmov %p3830_p8 }
  0x5b   : > { %v3770_v0 = vmov 0.0   ;;  %vm2608_vm0 = vmmov 0   ;;  %v323_v1 = vld [vmem:[#allocation5 + $0x78] sm:$0xff]  ;;  %v322_v2 = vld [vmem:[#allocation5 + $0x70] sm:$0xff]  ;;  %v321_v3 = vld [vmem:[#allocation5 + $0x68] sm:$0xff]  ;;  %s2024_s25 = sshll.u32 %s2667_s23, 7 }
  0x5c   : > { %2575 = vsyncadd (%p3831_p7), [#allocation6], 4294961152  ;;  %2132 = vmatprep.subr.mxu0 %v3770_v0  ;;  %2167 = vmatprep.subr.mxu1 %v3770_v0  ;;  %v2786_v4 = vand.u32 4294901760, %v323_v1  ;;  %v2788_v5 = vand.u32 4294901760, %v322_v2  ;;  %v2790_v6 = vand.u32 4294901760, %v321_v3  ;;  %v320_v7 = vld [vmem:[#allocation5 + $0x60] sm:$0xff]  ;;  %s3694_s15 = scalar_lea.hbm %s3754_s5, %s2024_s25 }
  0x5d   : > { %2164 = vmatprep.mubr.msk.f32.mxu0 %vm2608_vm0, %v3770_v0  ;;  %2199 = vmatprep.mubr.msk.f32.mxu1 %vm2608_vm0, %v3770_v0  ;;  %v319_v8 = vld [vmem:[#allocation5 + $0x58] sm:$0xff]  ;;  %v318_v9 = vld [vmem:[#allocation5 + $0x50] sm:$0xff]  ;;  %v2792_v10 = vand.u32 4294901760, %v320_v7  ;;  %v317_v13 = vld [vmem:[#allocation5 + $0x48] sm:$0xff]  ;;  %s299_s27 = scalar_lea.vmem [#allocation8], %s2017_s16  ;;  %s1856_s20 = scalar_lea.sflag [#allocation4], %s2764_s12 }
  0x5e   : > { %v2794_v11 = vand.u32 4294901760, %v319_v8  ;;  %v2796_v12 = vand.u32 4294901760, %v318_v9  ;;  %v316_v14 = vld [vmem:[#allocation5 + $0x40] sm:$0xff]  ;;  %2133 = vmatpush3.msra.mxu0 %v2786_v4  ;;  %v2800_v15 = vsub.f32 %v323_v1, %v2786_v4  ;;  %v2803_v16 = vsub.f32 %v322_v2, %v2788_v5  ;;  %v315_v19 = vld [vmem:[#allocation5 + $0x38] sm:$0xff]  ;;  %v314_v26 = vld [vmem:[#allocation5 + $0x30] sm:$0xff]  ;;  %s1874_s11 = sshll.u32 %s299_s27, 4  ;;  %s1875_s11 = int_to_ptr.vmem [resolvable:$true] %s1874_s11 }
  0x5f   : > { %v2805_v17 = vand.u32 4294901760, %v317_v13  ;;  %v2808_v18 = vsub.f32 %v321_v3, %v2790_v6  ;;  %2134 = vmatprep.subr.mxu0 %v3770_v0  ;;  %v2812_v20 = vsub.f32 %v320_v7, %v2792_v10  ;;  %v2821_v25 = vand.u32 4294901760, %v316_v14  ;;  %v313_v36 = vld [vmem:[#allocation5 + $0x28] sm:$0xff]  ;;  %v312_v41 = vld [vmem:[#allocation5 + $0x20] sm:$0xff]  ;;  %v311_v49 = vld [vmem:[#allocation5 + $0x18] sm:$0xff]  ;;  %s2500_s24 = scalar_lea.vmem %s1875_s11, 128 }
  0x60   : > { %v2815_v21 = vsub.f32 %v319_v8, %v2794_v11  ;;  %2135 = vmatpush3.msra.mxu0 %v2788_v5  ;;  %v418_v22 = vand.u32 4294901760, %v2800_v15  ;;  %v425_v23 = vand.u32 4294901760, %v2803_v16  ;;  %v2825_v28 = vand.u32 4294901760, %v315_v19  ;;  %v307_v50 = vld [vmem:[%s2770_s18] sm:$0xff]  ;;  %v309_v60 = vld [vmem:[#allocation5 + $0x8] sm:$0xff]  ;;  %v308_v7 = vld [vmem:[#allocation5] sm:$0xff]  ;;  %p2501_p11 = scmp.ne.s32.totalorder %s1875_s11, %s2500_s24 }
  0x61   : > { %v432_v24 = vand.u32 4294901760, %v2808_v18  ;;  %2136 = vmatprep.subr.mxu0 %v3770_v0  ;;  %v439_v27 = vand.u32 4294901760, %v2812_v20  ;;  %v2829_v30 = vsub.f32 %v318_v9, %v2796_v12  ;;  %v2842_v34 = vsub.f32 %v317_v13, %v2805_v17  ;;  %v310_v54 = vld [vmem:[#allocation5 + $0x10] sm:$0xff]  ;;  %p3938_p0 = scmp.ne.s32.totalorder %s3826_s29, 0  ;;  %s2609_s7 = smov [#allocation8]  }
  0x62   : > { %v446_v29 = vand.u32 4294901760, %v2815_v21  ;;  %2137 = vmatpush3.msra.mxu0 %v2790_v6  ;;  %v419_v31 = vsub.f32 %v2800_v15, %v418_v22  ;;  %v426_v32 = vsub.f32 %v2803_v16, %v425_v23  ;;  %v2845_v35 = vand.u32 4294901760, %v314_v26  ;;  %s2504_s8 = sshll.u32 %s2609_s7, 4  ;;  %s2505_s8 = int_to_ptr.vmem [resolvable:$false] %s2504_s8 }
  0x63   : > { %v433_v33 = vsub.f32 %v2808_v18, %v432_v24  ;;  %2138 = vmatprep.subr.mxu0 %v3770_v0  ;;  %v440_v39 = vsub.f32 %v2812_v20, %v439_v27  ;;  %v453_v40 = vand.u32 4294901760, %v2829_v30  ;;  %v2857_v43 = vsub.f32 %v316_v14, %v2821_v25  ;;  %p2502_p1 = pnand %p2501_p11, %p3938_p0  ;;  %s2506_s30 = scalar_lea.vmem %s2505_s8, 256 }
  0x64   : > { %2139 = vmatpush3.msra.mxu0 %v2792_v10  ;;  %v420_v37 = vand.u32 4294901760, %v419_v31  ;;  %v427_v38 = vand.u32 4294901760, %v426_v32  ;;  %v447_v42 = vsub.f32 %v2815_v21, %v446_v29  ;;  %v2860_v45 = vand.u32 4294901760, %v313_v36  ;;  %p2507_p6 = scmp.lt.s32.totalorder %s1875_s11, %s2505_s8  ;;  %p2508_p12 = scmp.lt.s32.totalorder %s2506_s30, %s2500_s24 }
  0x65   : > { %2140 = vmatprep.subr.mxu0 %v3770_v0  ;;  %v434_v44 = vand.u32 4294901760, %v433_v33  ;;  %v460_v46 = vand.u32 4294901760, %v2842_v34  ;;  %v2864_v47 = vsub.f32 %v315_v19, %v2825_v28  ;;  %v2868_v48 = vand.u32 4294901760, %v312_v41  ;;  %p2503_p2 = pneg %p2502_p1 }
  0x66   : > { %2141 = vmatpush3.msra.mxu0 %v2794_v11  ;;  %2168 = vmatpush3.msra.mxu1 %v420_v37  ;;  %v441_v51 = vand.u32 4294901760, %v440_v39  ;;  %v454_v52 = vsub.f32 %v2829_v30, %v453_v40  ;;  %v467_v53 = vand.u32 4294901760, %v2857_v43  ;;  %v2877_v55 = vsub.f32 %v314_v26, %v2845_v35  ;;  %p2509_p3 = por %p2508_p12, %p2507_p6 }
  0x67   : > { %2142 = vmatprep.subr.mxu0 %v3770_v0  ;;  %2169 = vmatprep.subr.mxu1 %v3770_v0  ;;  %v448_v56 = vand.u32 4294901760, %v447_v42  ;;  %v474_v57 = vand.u32 4294901760, %v2864_v47  ;;  %v461_v58 = vsub.f32 %v2842_v34, %v460_v46  ;;  %v2886_v59 = vand.u32 4294901760, %v311_v49 }
  0x68   : > { %2143 = vmatpush3.msra.mxu0 %v2796_v12  ;;  %2170 = vmatpush3.msra.mxu1 %v427_v38  ;;  %v2889_v61 = vsub.f32 %v313_v36, %v2860_v45  ;;  %v2891_v62 = vand.u32 4294901760, %v307_v50  ;;  %v2895_v63 = vand.u32 4294901760, %v310_v54  ;;  %v455_v1 = vand.u32 4294901760, %v454_v52  ;;  %p2510_p9 = pnand %p2509_p3, %p2503_p2 }
  0x69   : > { %2144 = vmatprep.subr.mxu0 %v3770_v0  ;;  %2171 = vmatprep.subr.mxu1 %v3770_v0  ;;  %v468_v2 = vsub.f32 %v2857_v43, %v467_v53  ;;  %v481_v3 = vand.u32 4294901760, %v2877_v55  ;;  %v2903_v8 = vsub.f32 %v312_v41, %v2868_v48  ;;  %v475_v9 = vsub.f32 %v2864_v47, %v474_v57 }
  0x6a   : > { %2145 = vmatpush3.msra.mxu0 %v2805_v17  ;;  %2172 = vmatpush3.msra.mxu1 %v434_v44  ;;  %3832 = vst [vmem:[#allocation15_spill] sm:$0xff] %v2891_v62  ;;  %v2910_v13 = vand.u32 4294901760, %v309_v60  ;;  %v462_v14 = vand.u32 4294901760, %v461_v58  ;;  %v488_v19 = vand.u32 4294901760, %v2889_v61  ;;  %v2915_v26 = vsub.f32 %v307_v50, %v2891_v62 }
  0x6b   : > { %2146 = vmatprep.subr.mxu0 %v3770_v0  ;;  %2173 = vmatprep.subr.mxu1 %v3770_v0  ;;  %v2918_v31 = vsub.f32 %v311_v49, %v2886_v59  ;;  %v2922_v32 = vand.u32 4294901760, %v308_v7  ;;  %v469_v33 = vand.u32 4294901760, %v468_v2  ;;  %v482_v36 = vsub.f32 %v2877_v55, %v481_v3 }
  0x6c   : > { %2147 = vmatpush3.msra.mxu0 %v2821_v25  ;;  %2174 = vmatpush3.msra.mxu1 %v441_v51  ;;  %3833 = vst [vmem:[#allocation16_spill] sm:$0xff] %v2915_v26  ;;  %v495_v37 = vand.u32 4294901760, %v2903_v8  ;;  %v2930_v38 = vsub.f32 %v310_v54, %v2895_v63  ;;  %v476_v39 = vand.u32 4294901760, %v475_v9  ;;  %v489_v41 = vsub.f32 %v2889_v61, %v488_v19 }
  0x6d   : > { %2148 = vmatprep.subr.mxu0 %v3770_v0  ;;  %2175 = vmatprep.subr.mxu1 %v3770_v0  ;;  %v2939_v42 = vand.u32 4294901760, %v2915_v26  ;;  %v502_v44 = vand.u32 4294901760, %v2918_v31  ;;  %v2943_v49 = vsub.f32 %v309_v60, %v2910_v13  ;;  %v483_v50 = vand.u32 4294901760, %v482_v36 }
  0x6e   : > { %2149 = vmatpush3.msra.mxu0 %v2825_v28  ;;  %2176 = vmatpush3.msra.mxu1 %v448_v56  ;;  %v496_v51 = vsub.f32 %v2903_v8, %v495_v37  ;;  %v509_v52 = vand.u32 4294901760, %v2930_v38  ;;  %v2953_v54 = vsub.f32 %v308_v7, %v2922_v32  ;;  %v490_v56 = vand.u32 4294901760, %v489_v41 }
  0x6f   : > { %2150 = vmatprep.subr.mxu0 %v3770_v0  ;;  %2177 = vmatprep.subr.mxu1 %v3770_v0  ;;  %3834 = vst [vmem:[#allocation17_spill] sm:$0xff] %v2939_v42  ;;  %v408_v58 = vsub.f32 %v2915_v26, %v2939_v42  ;;  %v503_v60 = vsub.f32 %v2918_v31, %v502_v44 }
  0x70   : > { %2151 = vmatpush3.msra.mxu0 %v2845_v35  ;;  %2178 = vmatpush3.msra.mxu1 %v455_v1  ;;  %v516_v1 = vand.u32 4294901760, %v2943_v49  ;;  %v497_v2 = vand.u32 4294901760, %v496_v51  ;;  %v510_v7 = vsub.f32 %v2930_v38, %v509_v52  ;;  %v523_v9 = vand.u32 4294901760, %v2953_v54 }
  0x71   : > { %2152 = vmatprep.subr.mxu0 %v3770_v0  ;;  %2179 = vmatprep.subr.mxu1 %v3770_v0 }
  0x72   : > { %2153 = vmatpush3.msra.mxu0 %v2860_v45  ;;  %2180 = vmatpush3.msra.mxu1 %v462_v14  ;;  %v2974_v14 = vand.u32 4294901760, %v408_v58  ;;  %v517_v36 = vsub.f32 %v2943_v49, %v516_v1  ;;  %v524_v41 = vsub.f32 %v2953_v54, %v523_v9 }
  0x73   : > { %2154 = vmatprep.subr.mxu0 %v3770_v0  ;;  %2181 = vmatprep.subr.mxu1 %v3770_v0 }
  0x74   : > { %2155 = vmatpush3.msra.mxu0 %v2868_v48  ;;  %2182 = vmatpush3.msra.mxu1 %v469_v33  ;;  %v504_v33 = vand.u32 4294901760, %v503_v60  ;;  %v525_v51 = vand.u32 4294901760, %v524_v41 }
  0x75   : > { %2156 = vmatprep.subr.mxu0 %v3770_v0  ;;  %2183 = vmatprep.subr.mxu1 %v3770_v0 }
  0x76   : > { %2157 = vmatpush3.msra.mxu0 %v2886_v59  ;;  %2184 = vmatpush3.msra.mxu1 %v476_v39  ;;  %v511_v39 = vand.u32 4294901760, %v510_v7  ;;  %v983_v7 = vld [vmem:[#allocation7 + $0x88] sm:$0xff] }
  0x77   : > { %2158 = vmatprep.subr.mxu0 %v3770_v0  ;;  %2185 = vmatprep.subr.mxu1 %v3770_v0 }
  0x78   : > { %2159 = vmatpush3.msra.mxu0 %v2895_v63  ;;  %2186 = vmatpush3.msra.mxu1 %v483_v50  ;;  %v518_v50 = vand.u32 4294901760, %v517_v36 }
  0x79   : > { %2160 = vmatprep.subr.mxu0 %v3770_v0  ;;  %2187 = vmatprep.subr.mxu1 %v3770_v0 }
  0x7a   : > { %2161 = vmatpush3.msra.mxu0 %v2910_v13  ;;  %2188 = vmatpush3.msra.mxu1 %v490_v56  ;;  %v985_v56 = vld [vmem:[#allocation7 + $0x98] sm:$0xff] }
  0x7b   : > { %2162 = vmatprep.subr.mxu0 %v3770_v0  ;;  %2189 = vmatprep.subr.mxu1 %v3770_v0 }
  0x7c   : > { %2163 = vmatpush3.msra.mxu0 %v2922_v32  ;;  %2190 = vmatpush3.msra.mxu1 %v497_v2 }
  0x7d   : > { %2191 = vmatprep.subr.mxu1 %v3770_v0  ;;  %2202 = vmatprep.subr.mxu0 %v3770_v0 }
  0x7e   : > { %2165 = vmatmul.mubr.f32.vlgmr.msra.gmra.mxu0 %v2974_v14  ;;  %2192 = vmatpush3.msra.mxu1 %v504_v33 }
  0x7f   : > { %2203 = vmatpush3.msra.mxu0 %v2800_v15  ;;  %2193 = vmatprep.subr.mxu1 %v3770_v0  ;;  %v996_v15 = vld [vmem:[#allocation7 + $0xf0] sm:$0xff] }
  0x80   : > { %2204 = vmatprep.subr.mxu0 %v3770_v0  ;;  %2194 = vmatpush3.msra.mxu1 %v511_v39 }
  0x81   : > { %2205 = vmatpush3.msra.mxu0 %v2803_v16  ;;  %2195 = vmatprep.subr.mxu1 %v3770_v0  ;;  %v3100_v16 = vand.u32 4294901760, %v996_v15 }
  0x82   : > { %2206 = vmatprep.subr.mxu0 %v3770_v0  ;;  %2196 = vmatpush3.msra.mxu1 %v518_v50 }
  0x83   : > { %2207 = vmatpush3.msra.mxu0 %v2808_v18  ;;  %2197 = vmatprep.subr.mxu1 %v3770_v0  ;;  %v995_v18 = vld [vmem:[#allocation7 + $0xe8] sm:$0xff] }
  0x84   : > { %2208 = vmatprep.subr.mxu0 %v3770_v0  ;;  %2198 = vmatpush3.msra.mxu1 %v525_v51  ;;  %v980_v51 = vld [vmem:[#allocation7 + $0x70] sm:$0xff] }
  0x85   : > { %2209 = vmatpush3.msra.mxu0 %v2812_v20  ;;  %2200 = vmatmul.mubr.f32.vlgmr.msra.gmra.mxu1 %v2891_v62  ;;  %v993_v20 = vld [vmem:[#allocation7 + $0xd8] sm:$0xff] }
  0x86   : > { %2210 = vmatprep.subr.mxu0 %v3770_v0  ;;  %2237 = vmatprep.subr.mxu1 %v3770_v0 }
  0x87   : > { %2211 = vmatpush3.msra.mxu0 %v2815_v21  ;;  %2238 = vmatpush3.msra.mxu1 %v2786_v4  ;;  %v3115_v21 = vsub.f32 %v996_v15, %v3100_v16  ;;  %v977_v15 = vld [vmem:[#allocation7 + $0x58] sm:$0xff] }
  0x88   : > { %2212 = vmatprep.subr.mxu0 %v3770_v0  ;;  %2239 = vmatprep.subr.mxu1 %v3770_v0 }
  0x89   : > { %2213 = vmatpush3.msra.mxu0 %v2829_v30  ;;  %2240 = vmatpush3.msra.mxu1 %v2788_v5 }
  0x8a   : > { %2214 = vmatprep.subr.mxu0 %v3770_v0  ;;  %2241 = vmatprep.subr.mxu1 %v3770_v0 }
  0x8b   : > { %2215 = vmatpush3.msra.mxu0 %v2842_v34  ;;  %2242 = vmatpush3.msra.mxu1 %v2790_v6  ;;  %v988_v34 = vld [vmem:[#allocation7 + $0xb0] sm:$0xff] }
  0x8c   : > { %2216 = vmatprep.subr.mxu0 %v3770_v0  ;;  %2243 = vmatprep.subr.mxu1 %v3770_v0 }
  0x8d   : > { %2217 = vmatpush3.msra.mxu0 %v2857_v43  ;;  %2244 = vmatpush3.msra.mxu1 %v2792_v10 }
  0x8e   : > { %2218 = vmatprep.subr.mxu0 %v3770_v0  ;;  %2245 = vmatprep.subr.mxu1 %v3770_v0 }
  0x8f   : > { %2219 = vmatpush3.msra.mxu0 %v2864_v47  ;;  %2246 = vmatpush3.msra.mxu1 %v2794_v11  ;;  %v986_v47 = vld [vmem:[#allocation7 + $0xa0] sm:$0xff] }
  0x90   : > { %2220 = vmatprep.subr.mxu0 %v3770_v0  ;;  %2247 = vmatprep.subr.mxu1 %v3770_v0 }
  0x91   : > { %2221 = vmatpush3.msra.mxu0 %v2877_v55  ;;  %2248 = vmatpush3.msra.mxu1 %v2796_v12  ;;  %v987_v55 = vld [vmem:[#allocation7 + $0xa8] sm:$0xff] }
  0x92   : > { %2222 = vmatprep.subr.mxu0 %v3770_v0  ;;  %2249 = vmatprep.subr.mxu1 %v3770_v0 }
  0x93   : > { %2223 = vmatpush3.msra.mxu0 %v2889_v61  ;;  %2250 = vmatpush3.msra.mxu1 %v2805_v17 }
  0x94   : > { %2224 = vmatprep.subr.mxu0 %v3770_v0  ;;  %2251 = vmatprep.subr.mxu1 %v3770_v0 }
  0x95   : > { %2225 = vmatpush3.msra.mxu0 %v2903_v8  ;;  %2252 = vmatpush3.msra.mxu1 %v2821_v25 }
  0x96   : > { %2226 = vmatprep.subr.mxu0 %v3770_v0  ;;  %2253 = vmatprep.subr.mxu1 %v3770_v0 }
  0x97   : > { %2227 = vmatpush3.msra.mxu0 %v2918_v31  ;;  %2254 = vmatpush3.msra.mxu1 %v2825_v28  ;;  %v3169_v31 = vand.u32 4294901760, %v986_v47 }
  0x98   : > { %2228 = vmatprep.subr.mxu0 %v3770_v0  ;;  %2255 = vmatprep.subr.mxu1 %v3770_v0 }
  0x99   : > { %2229 = vmatpush3.msra.mxu0 %v2930_v38  ;;  %2256 = vmatpush3.msra.mxu1 %v2845_v35  ;;  %3840 = vst [vmem:[#allocation23_spill] sm:$0xff] %v3169_v31  ;;  %v3211_v33 = vsub.f32 %v986_v47, %v3169_v31 }
  0x9a   : > { %2230 = vmatprep.subr.mxu0 %v3770_v0  ;;  %2257 = vmatprep.subr.mxu1 %v3770_v0 }
  0x9b   : > { %2231 = vmatpush3.msra.mxu0 %v2943_v49  ;;  %2258 = vmatpush3.msra.mxu1 %v2860_v45 }
  0x9c   : > { %2232 = vmatprep.subr.mxu0 %v3770_v0  ;;  %2259 = vmatprep.subr.mxu1 %v3770_v0 }
  0x9d   : > { %2233 = vmatpush3.msra.mxu0 %v2953_v54  ;;  %2234 = vmatprep.mubr.msk.f32.mxu0 %vm2608_vm0, %v3770_v0  ;;  %v3213_v54 = vand.u32 4294901760, %v985_v56 }
  0x9e   : > { %2260 = vmatpush3.msra.mxu1 %v2868_v48  ;;  %2235 = vmatmul.mubr.f32.vlgmr.msra.gmra.mxu0 %v2915_v26  ;;  %v3332_v26 = vand.u32 4294901760, %v977_v15 }
  0x9f   : > { %2261 = vmatprep.subr.mxu1 %v3770_v0  ;;  %2272 = vmatprep.subr.mxu0 %v3770_v0  ;;  %3843 = vst [vmem:[#allocation26_spill] sm:$0xff] %v3213_v54 }
  0xa0   : > { %2262 = vmatpush3.msra.mxu1 %v2886_v59  ;;  %2273 = vmatpush3.msra.mxu0 %v418_v22  ;;  %v3117_v22 = vand.u32 4294901760, %v995_v18  ;;  %3853 = vst [vmem:[#allocation35_spill] sm:$0xff] %v3332_v26 }
  0xa1   : > { %2263 = vmatprep.subr.mxu1 %v3770_v0  ;;  %2274 = vmatprep.subr.mxu0 %v3770_v0 }
  0xa2   : > { %2264 = vmatpush3.msra.mxu1 %v2895_v63  ;;  %2275 = vmatpush3.msra.mxu0 %v425_v23  ;;  %v990_v23 = vld [vmem:[#allocation7 + $0xc0] sm:$0xff] }
  0xa3   : > { %2265 = vmatprep.subr.mxu1 %v3770_v0  ;;  %2276 = vmatprep.subr.mxu0 %v3770_v0  ;;  %v3136_v30 = vand.u32 4294901760, %v990_v23 }
  0xa4   : > { %2266 = vmatpush3.msra.mxu1 %v2910_v13  ;;  %2277 = vmatpush3.msra.mxu0 %v432_v24 }
  0xa5   : > { %2267 = vmatprep.subr.mxu1 %v3770_v0  ;;  %2278 = vmatprep.subr.mxu0 %v3770_v0  ;;  %3836 = vst [vmem:[#allocation19_spill] sm:$0xff] %v3136_v30  ;;  %v3165_v8 = vsub.f32 %v990_v23, %v3136_v30 }
  0xa6   : > { %2268 = vmatpush3.msra.mxu1 %v2922_v32  ;;  %2269 = vmatprep.mubr.msk.f32.mxu1 %vm2608_vm0, %v3770_v0 }
  0xa7   : > { %2279 = vmatpush3.msra.mxu0 %v439_v27  ;;  %2270 = vmatmul.mubr.f32.vlgmr.msra.gmra.mxu1 %v2939_v42  ;;  %v3127_v27 = vand.u32 4294901760, %v993_v20  ;;  %v3763_v36 = vand.u32 4294901760, %v3165_v8 }
  0xa8   : > { %2280 = vmatprep.subr.mxu0 %v3770_v0  ;;  %2307 = vmatprep.subr.mxu1 %v3770_v0 }
  0xa9   : > { %2281 = vmatpush3.msra.mxu0 %v446_v29  ;;  %2308 = vmatpush3.msra.mxu1 %v2786_v4  ;;  %v997_v4 = vld [vmem:[#allocation7 + $0xf8] sm:$0xff]  ;;  %v991_v29 = vld [vmem:[#allocation7 + $0xc8] sm:$0xff]  ;;  %v3260_v47 = vsub.f32 %v3165_v8, %v3763_v36  ;;  %v974_v36 = vld [vmem:[#allocation7 + $0x40] sm:$0xff] }
  0xaa   : > { %2282 = vmatprep.subr.mxu0 %v3770_v0  ;;  %2309 = vmatprep.subr.mxu1 %v3770_v0 }
  0xab   : > { %2283 = vmatpush3.msra.mxu0 %v453_v40  ;;  %2310 = vmatpush3.msra.mxu1 %v2788_v5  ;;  %v994_v5 = vld [vmem:[#allocation7 + $0xe0] sm:$0xff]  ;;  %v989_v40 = vld [vmem:[#allocation7 + $0xb8] sm:$0xff] }
  0xac   : > { %2284 = vmatprep.subr.mxu0 %v3770_v0  ;;  %2311 = vmatprep.subr.mxu1 %v3770_v0 }
  0xad   : > { %2285 = vmatpush3.msra.mxu0 %v460_v46  ;;  %2312 = vmatpush3.msra.mxu1 %v2790_v6  ;;  %v3098_v6 = vand.u32 4294901760, %v997_v4  ;;  %v3144_v46 = vsub.f32 %v995_v18, %v3117_v22  ;;  %v3239_v18 = vand.u32 4294901760, %v983_v7 }
  0xae   : > { %2286 = vmatprep.subr.mxu0 %v3770_v0  ;;  %2313 = vmatprep.subr.mxu1 %v3770_v0 }
  0xaf   : > { %2287 = vmatpush3.msra.mxu0 %v467_v53  ;;  %2314 = vmatpush3.msra.mxu1 %v2792_v10  ;;  %v3104_v10 = vand.u32 4294901760, %v994_v5  ;;  %v3120_v24 = vsub.f32 %v997_v4, %v3098_v6  ;;  %v3148_v53 = vand.u32 4294901760, %v991_v29  ;;  %3844 = vst [vmem:[#allocation27_spill] sm:$0xff] %v3239_v18 }
  0xb0   : > { %2288 = vmatprep.subr.mxu0 %v3770_v0  ;;  %2315 = vmatprep.subr.mxu1 %v3770_v0 }
  0xb1   : > { %2289 = vmatpush3.msra.mxu0 %v474_v57  ;;  %2316 = vmatpush3.msra.mxu1 %v2794_v11  ;;  %v992_v11 = vld [vmem:[#allocation7 + $0xd0] sm:$0xff]  ;;  %v3766_v43 = vand.u32 4294901760, %v3120_v24  ;;  %3837 = vst [vmem:[#allocation20_spill] sm:$0xff] %v3148_v53  ;;  %v3196_v58 = vsub.f32 %v991_v29, %v3148_v53 }
  0xb2   : > { %2290 = vmatprep.subr.mxu0 %v3770_v0  ;;  %2317 = vmatprep.subr.mxu1 %v3770_v0 }
  0xb3   : > { %2291 = vmatpush3.msra.mxu0 %v481_v3  ;;  %2318 = vmatpush3.msra.mxu1 %v2796_v12  ;;  %v3125_v12 = vsub.f32 %v994_v5, %v3104_v10  ;;  %v3160_v3 = vand.u32 4294901760, %v988_v34 }
  0xb4   : > { %2292 = vmatprep.subr.mxu0 %v3770_v0  ;;  %2319 = vmatprep.subr.mxu1 %v3770_v0 }
  0xb5   : > { %2293 = vmatpush3.msra.mxu0 %v488_v19  ;;  %2320 = vmatpush3.msra.mxu1 %v2805_v17  ;;  %v3132_v17 = vand.u32 4294901760, %v992_v11  ;;  %v3762_v57 = vand.u32 4294901760, %v3125_v12  ;;  %3838 = vst [vmem:[#allocation21_spill] sm:$0xff] %v3160_v3  ;;  %v3167_v19 = vand.u32 4294901760, %v989_v40  ;;  %v3203_v60 = vsub.f32 %v988_v34, %v3160_v3  ;;  %v981_v34 = vld [vmem:[#allocation7 + $0x78] sm:$0xff] }
  0xb6   : > { %2294 = vmatprep.subr.mxu0 %v3770_v0  ;;  %2321 = vmatprep.subr.mxu1 %v3770_v0 }
  0xb7   : > { %2295 = vmatpush3.msra.mxu0 %v495_v37  ;;  %2322 = vmatpush3.msra.mxu1 %v2821_v25  ;;  %3835 = vst [vmem:[#allocation18_spill] sm:$0xff] %v3132_v17  ;;  %v3765_v25 = vand.u32 4294901760, %v3115_v21  ;;  %v3158_v61 = vsub.f32 %v992_v11, %v3132_v17  ;;  %3839 = vst [vmem:[#allocation22_spill] sm:$0xff] %v3167_v19  ;;  %v984_v37 = vld [vmem:[#allocation7 + $0x90] sm:$0xff]  ;;  %v3217_v39 = vsub.f32 %v989_v40, %v3167_v19  ;;  %v978_v11 = vld [vmem:[#allocation7 + $0x60] sm:$0xff] }
  0xb8   : > { %2296 = vmatprep.subr.mxu0 %v3770_v0  ;;  %2323 = vmatprep.subr.mxu1 %v3770_v0  ;;  %v3768_v40 = vand.u32 4294901760, %v3203_v60 }
  0xb9   : > { %2297 = vmatpush3.msra.mxu0 %v502_v44  ;;  %2324 = vmatpush3.msra.mxu1 %v2825_v28  ;;  %v3152_v28 = vsub.f32 %v993_v20, %v3127_v27  ;;  %v3182_v38 = vsub.f32 %v3115_v21, %v3765_v25  ;;  %v3184_v44 = vand.u32 4294901760, %v987_v55  ;;  %v3760_v2 = vand.u32 4294901760, %v3158_v61 }
  0xba   : > { %2298 = vmatprep.subr.mxu0 %v3770_v0  ;;  %2325 = vmatprep.subr.mxu1 %v3770_v0  ;;  %v3767_v20 = vand.u32 4294901760, %v3196_v58  ;;  %v3283_v25 = vand.u32 4294901760, %v981_v34 }
  0xbb   : > { %2299 = vmatpush3.msra.mxu0 %v509_v52  ;;  %2326 = vmatpush3.msra.mxu1 %v2845_v35  ;;  %v3177_v35 = vsub.f32 %v3120_v24, %v3766_v43  ;;  %3841 = vst [vmem:[#allocation24_spill] sm:$0xff] %v3184_v44  ;;  %v3764_v52 = vand.u32 4294901760, %v3144_v46  ;;  %v3761_v49 = vand.u32 4294901760, %v3152_v28  ;;  %v3229_v4 = vsub.f32 %v987_v55, %v3184_v44 }
  0xbc   : > { %2300 = vmatprep.subr.mxu0 %v3770_v0  ;;  %2327 = vmatprep.subr.mxu1 %v3770_v0  ;;  %v3250_v23 = vsub.f32 %v3158_v61, %v3760_v2  ;;  %v3769_v55 = vand.u32 4294901760, %v3217_v39  ;;  %v3266_v2 = vsub.f32 %v985_v56, %v3213_v54  ;;  %v3281_v56 = vsub.f32 %v3196_v58, %v3767_v20 }
  0xbd   : > { %2301 = vmatpush3.msra.mxu0 %v516_v1  ;;  %2328 = vmatpush3.msra.mxu1 %v2860_v45  ;;  %v3192_v45 = vsub.f32 %v3125_v12, %v3762_v57  ;;  %v3205_v1 = vand.u32 4294901760, %v984_v37  ;;  %v1110_v41 = vand.u32 4294901760, %v3177_v35  ;;  %v3226_v50 = vsub.f32 %v3144_v46, %v3764_v52  ;;  %v979_v35 = vld [vmem:[#allocation7 + $0x68] sm:$0xff]  ;;  %3848 = vst [vmem:[#allocation31_spill] sm:$0xff] %v3283_v25 }
  0xbe   : > { %2302 = vmatprep.subr.mxu0 %v3770_v0  ;;  %2329 = vmatprep.subr.mxu1 %v3770_v0  ;;  %v3237_v5 = vsub.f32 %v3152_v28, %v3761_v49  ;;  %v3774_v49 = vand.u32 4294901760, %v3229_v4  ;;  %v3272_v57 = vand.u32 4294901760, %v978_v11  ;;  %v3299_v20 = vand.u32 4294901760, %v979_v35 }
  0xbf   : > { %2303 = vmatpush3.msra.mxu0 %v523_v9  ;;  %2304 = vmatprep.mubr.msk.f32.mxu0 %vm2608_vm0, %v3770_v0  ;;  %3842 = vst [vmem:[#allocation25_spill] sm:$0xff] %v3205_v1  ;;  %v982_v9 = vld [vmem:[#allocation7 + $0x80] sm:$0xff]  ;;  %v1146_v42 = vand.u32 4294901760, %v3281_v56 }
  0xc0   : > { %2330 = vmatpush3.msra.mxu1 %v2868_v48  ;;  %2305 = vmatmul.mubr.f32.vlgmr.msra.gmra.mxu0 %v2891_v62  ;;  %v3252_v29 = vand.u32 4294901760, %v982_v9  ;;  %3847 = vst [vmem:[#allocation30_spill] sm:$0xff] %v3272_v57  ;;  %v1134_v52 = vand.u32 4294901760, %v3237_v5  ;;  %v3297_v5 = vsub.f32 %v3203_v60, %v3768_v40  ;;  %3851 = vst [vmem:[#allocation34_spill] sm:$0xff] %v3299_v20  ;;  %v976_v48 = vld [vmem:[#allocation7 + $0x50] sm:$0xff]  ;;  %v975_v40 = vld [vmem:[#allocation7 + $0x48] sm:$0xff] }
  0xc1   : > { %2331 = vmatprep.subr.mxu1 %v3770_v0  ;;  %999 = vmatprep.subr.mxu0 %v3098_v6 }
  0xc2   : > { %2332 = vmatpush3.msra.mxu1 %v2886_v59  ;;  %1001 = vmatpush1.msra.mxu0 %v3100_v16  ;;  %v3245_v59 = vsub.f32 %v984_v37, %v3205_v1  ;;  %3845 = vst [vmem:[#allocation28_spill] sm:$0xff] %v3252_v29  ;;  %v3263_v37 = vand.u32 4294901760, %v980_v51  ;;  %v3292_v43 = vsub.f32 %v982_v9, %v3252_v29 }
  0xc3   : > { %2333 = vmatprep.subr.mxu1 %v3770_v0  ;;  %1003 = vmatprep.subr.mxu0 %v3117_v22  ;;  %v3308_v9 = vsub.f32 %v3217_v39, %v3769_v55  ;;  %v3852_v55 = vand.u32 4294901760, %v3211_v33 }
  0xc4   : > { %2334 = vmatpush3.msra.mxu1 %v2895_v63  ;;  %1005 = vmatpush1.msra.mxu0 %v3104_v10  ;;  %3846 = vst [vmem:[#allocation29_spill] sm:$0xff] %v3263_v37  ;;  %v1122_v63 = vand.u32 4294901760, %v3226_v50  ;;  %v3286_v50 = vsub.f32 %v983_v7, %v3239_v18  ;;  %3850 = vst [vmem:[#allocation33_spill] sm:$0xff] %v3292_v43  ;;  %v1152_v7 = vand.u32 4294901760, %v3260_v47 }
  0xc5   : > { %2335 = vmatprep.subr.mxu1 %v3770_v0  ;;  %1007 = vmatprep.subr.mxu0 %v3127_v27  ;;  %v3322_v47 = vsub.f32 %v978_v11, %v3272_v57  ;;  %v3336_v11 = vsub.f32 %v981_v34, %v3283_v25  ;;  %v1158_v34 = vand.u32 4294901760, %v3308_v9  ;;  %v3859_v9 = vand.u32 4294901760, %v3245_v59 }
  0xc6   : > { %2336 = vmatpush3.msra.mxu1 %v2910_v13  ;;  %1009 = vmatpush1.msra.mxu0 %v3132_v17  ;;  %3849 = vst [vmem:[#allocation32_spill] sm:$0xff] %v3286_v50  ;;  %v1140_v13 = vand.u32 4294901760, %v3250_v23  ;;  %v3311_v23 = vsub.f32 %v980_v51, %v3263_v37  ;;  %v3327_v51 = vsub.f32 %v3211_v33, %v3852_v55  ;;  %v3854_v55 = vand.u32 4294901760, %v3182_v38  ;;  %v970_v17 = vld [vmem:[#allocation7 + $0x20] sm:$0xff] }
  0xc7   : > { %2337 = vmatprep.subr.mxu1 %v3770_v0  ;;  %1011 = vmatprep.subr.mxu0 %v3148_v53  ;;  %v3342_v53 = vand.u32 4294901760, %v976_v48  ;;  %v3354_v38 = vand.u32 4294901760, %v975_v40 }
  0xc8   : > { %2338 = vmatpush3.msra.mxu1 %v2922_v32  ;;  %2339 = vmatprep.mubr.msk.f32.mxu1 %vm2608_vm0, %v3770_v0  ;;  %v3319_v32 = vsub.f32 %v3229_v4, %v3774_v49  ;;  %v1164_v0 = vand.u32 4294901760, %v3297_v5  ;;  %v3857_v49 = vand.u32 4294901760, %v3266_v2  ;;  %v3357_v5 = vsub.f32 %v979_v35, %v3299_v20 }
  0xc9   : > { %1013 = vmatpush1.msra.mxu0 %v3136_v30  ;;  %2340 = vmatmul.mubr.f32.vlgmr.msra.gmra.mxu1 %v2891_v62  ;;  %v972_v30 = vld [vmem:[#allocation7 + $0x30] sm:$0xff]  ;;  %3855 = vst [vmem:[#allocation36_spill] sm:$0xff] %v3342_v53  ;;  %v3860_v35 = vand.u32 4294901760, %v3286_v50 }
  0xca   : > { %1015 = vmatprep.subr.mxu0 %v3167_v19  ;;  %1111 = vmatprep.subr.mxu1 %v1110_v41  ;;  %v3344_v41 = vand.u32 4294901760, %v974_v36  ;;  %v973_v19 = vld [vmem:[#allocation7 + $0x38] sm:$0xff]  ;;  %v1170_v56 = vand.u32 4294901760, %v3319_v32 }
  0xcb   : > { %1017 = vmatpush1.msra.mxu0 %v3160_v3  ;;  %1117 = vmatpush1.msra.mxu1 %v3854_v55  ;;  %v3352_v3 = vsub.f32 %v3266_v2, %v3857_v49  ;;  %v3858_v55 = vand.u32 4294901760, %v3192_v45  ;;  %v3369_v49 = vand.u32 4294901760, %v972_v30  ;;  %v3375_v45 = vsub.f32 %v3286_v50, %v3860_v35 }
  0xcc   : > { %3856 = vst [vmem:[#allocation37_spill] sm:$0xff] %v3344_v41  ;;  %1019 = vmatprep.subr.mxu0 %v3184_v44  ;;  %1123 = vmatprep.subr.mxu1 %v1122_v63  ;;  %v1176_v63 = vand.u32 4294901760, %v3327_v51  ;;  %v3367_v44 = vsub.f32 %v3245_v59, %v3859_v9  ;;  %v971_v51 = vld [vmem:[#allocation7 + $0x28] sm:$0xff]  ;;  %v3385_v9 = vsub.f32 %v976_v48, %v3342_v53  ;;  %v3862_v35 = vand.u32 4294901760, %v3292_v43  ;;  %v969_v48 = vld [vmem:[#allocation7 + $0x18] sm:$0xff] }
  0xcd   : > { %1021 = vmatpush1.msra.mxu0 %v3169_v31  ;;  %1129 = vmatpush1.msra.mxu1 %v3858_v55  ;;  %v3377_v55 = vand.u32 4294901760, %v973_v19  ;;  %v3381_v31 = vsub.f32 %v977_v15, %v3332_v26  ;;  %v1182_v15 = vand.u32 4294901760, %v3352_v3  ;;  %v3407_v50 = vand.u32 4294901760, %v971_v51  ;;  %v968_v3 = vld [vmem:[#allocation7 + $0x10] sm:$0xff] }
  0xce   : > { %1023 = vmatprep.subr.mxu0 %v3213_v54  ;;  %1135 = vmatprep.subr.mxu1 %v1134_v52  ;;  %v3388_v52 = vsub.f32 %v974_v36, %v3344_v41  ;;  %v1199_v54 = vsub.f32 %v3292_v43, %v3862_v35  ;;  %v1188_v36 = vand.u32 4294901760, %v3367_v44  ;;  %v3405_v35 = vsub.f32 %v972_v30, %v3369_v49  ;;  %v967_v44 = vld [vmem:[#allocation7 + $0x8] sm:$0xff]  ;;  %v966_v43 = vld [vmem:[#allocation7] sm:$0xff] }
  0xcf   : > { %1025 = vmatpush1.msra.mxu0 %v3205_v1  ;;  %1141 = vmatpush1.msra.mxu1 %v1140_v13  ;;  %v3397_v13 = vand.u32 4294901760, %v970_v17  ;;  %v3400_v1 = vsub.f32 %v975_v40, %v3354_v38  ;;  %v1194_v32 = vand.u32 4294901760, %v3375_v45  ;;  %v3863_v40 = vand.u32 4294901760, %v3336_v11 }
  0xd0   : > { %3861 = vst [vmem:[#allocation38_spill] sm:$0xff] %v3388_v52  ;;  %1027 = vmatprep.subr.mxu0 %v3239_v18  ;;  %1147 = vmatprep.subr.mxu1 %v1146_v42  ;;  %v3417_v30 = vsub.f32 %v973_v19, %v3377_v55  ;;  %v1200_v42 = vand.u32 4294901760, %v1199_v54  ;;  %v3864_v18 = vand.u32 4294901760, %v3311_v23  ;;  %v3868_v54 = vand.u32 4294901760, %v3381_v31 }
  0xd1   : > { %1029 = vmatpush1.msra.mxu0 %v3252_v29  ;;  %1153 = vmatpush1.msra.mxu1 %v1152_v7  ;;  %v1205_v29 = vsub.f32 %v3336_v11, %v3863_v40  ;;  %v3865_v40 = vand.u32 4294901760, %v3357_v5  ;;  %v3431_v7 = vsub.f32 %v970_v17, %v3397_v13 }
  0xd2   : > { %1031 = vmatprep.subr.mxu0 %v3283_v25  ;;  %1159 = vmatprep.subr.mxu1 %v1158_v34  ;;  %v1211_v34 = vsub.f32 %v3311_v23, %v3864_v18  ;;  %v3423_v25 = vand.u32 4294901760, %v969_v48  ;;  %v3867_v18 = vand.u32 4294901760, %v3322_v47 }
  0xd3   : > { %1033 = vmatpush1.msra.mxu0 %v3263_v37  ;;  %1165 = vmatpush1.msra.mxu1 %v1164_v0  ;;  %v1217_v19 = vsub.f32 %v3357_v5, %v3865_v40  ;;  %3866 = vst [vmem:[#allocation39_spill] sm:$0xff] %v3431_v7  ;;  %v3433_v0 = vand.u32 4294901760, %v968_v3  ;;  %v3444_v40 = vsub.f32 %v971_v51, %v3407_v50  ;;  %v1206_v17 = vand.u32 4294901760, %v1205_v29 }
  0xd4   : > { %1035 = vmatprep.subr.mxu0 %v3299_v20  ;;  %1171 = vmatprep.subr.mxu1 %v1170_v56  ;;  %v1223_v45 = vsub.f32 %v3322_v47, %v3867_v18  ;;  %v3440_v20 = vand.u32 4294901760, %v967_v44  ;;  %v1212_v18 = vand.u32 4294901760, %v1211_v34  ;;  %v3869_v56 = vand.u32 4294901760, %v3385_v9 }
  0xd5   : > { %1037 = vmatpush1.msra.mxu0 %v3272_v57  ;;  %1177 = vmatpush1.msra.mxu1 %v1176_v63  ;;  %v1229_v57 = vsub.f32 %v3381_v31, %v3868_v54  ;;  %v3450_v63 = vand.u32 4294901760, %v966_v43  ;;  %v1218_v29 = vand.u32 4294901760, %v1217_v19  ;;  %v3870_v54 = vand.u32 4294901760, %v3400_v1 }
  0xd6   : > { %1039 = vmatprep.subr.mxu0 %v3332_v26  ;;  %1183 = vmatprep.subr.mxu1 %v1182_v15  ;;  %v1235_v51 = vsub.f32 %v3385_v9, %v3869_v56  ;;  %v3458_v26 = vsub.f32 %v969_v48, %v3423_v25  ;;  %v3462_v15 = vsub.f32 %v968_v3, %v3433_v0  ;;  %v1224_v34 = vand.u32 4294901760, %v1223_v45 }
  0xd7   : > { %1041 = vmatpush1.msra.mxu0 %v3342_v53  ;;  %1189 = vmatpush1.msra.mxu1 %v1188_v36  ;;  %v1241_v37 = vsub.f32 %v3400_v1, %v3870_v54  ;;  %v3871_v48 = vand.u32 4294901760, %v3388_v52  ;;  %v3474_v19 = vsub.f32 %v967_v44, %v3440_v20  ;;  %v1230_v3 = vand.u32 4294901760, %v1229_v57 }
  0xd8   : > { %1043 = vmatprep.subr.mxu0 %v3354_v38  ;;  %1195 = vmatprep.subr.mxu1 %v1194_v32  ;;  %v3478_v54 = vsub.f32 %v966_v43, %v3450_v63  ;;  %v3873_v36 = vand.u32 4294901760, %v3417_v30  ;;  %v3811_v44 = vand.u32 4294901760, %v3458_v26  ;;  %v3874_v57 = vand.u32 4294901760, %v3405_v35 }
  0xd9   : > { %1045 = vmatpush1.msra.mxu0 %v3344_v41  ;;  %1201 = vmatpush1.msra.mxu1 %v1200_v42  ;;  %v1247_v56 = vsub.f32 %v3388_v52, %v3871_v48  ;;  %v1236_v48 = vand.u32 4294901760, %v1235_v51  ;;  %v3875_v45 = vand.u32 4294901760, %v3444_v40  ;;  %v3813_v51 = vand.u32 4294901760, %v3474_v19 }
  0xda   : > { %1047 = vmatprep.subr.mxu0 %v3377_v55  ;;  %1207 = vmatprep.subr.mxu1 %v1206_v17  ;;  %3872 = vst [vmem:[#allocation40_spill] sm:$0xff] %v3478_v54  ;;  %v1253_v42 = vsub.f32 %v3417_v30, %v3873_v36  ;;  %v1242_v17 = vand.u32 4294901760, %v1241_v37  ;;  %v1259_v43 = vsub.f32 %v3405_v35, %v3874_v57  ;;  %v3812_v32 = vand.u32 4294901760, %v3478_v54 }
  0xdb   : > { %1049 = vmatpush1.msra.mxu0 %v3369_v49  ;;  %1213 = vmatpush1.msra.mxu1 %v1212_v18  ;;  %v1248_v36 = vand.u32 4294901760, %v1247_v56  ;;  %v1265_v18 = vsub.f32 %v3444_v40, %v3875_v45 }
  0xdc   : > { %1051 = vmatprep.subr.mxu0 %v3407_v50  ;;  %1219 = vmatprep.subr.mxu1 %v1218_v29  ;;  %v1254_v37 = vand.u32 4294901760, %v1253_v42  ;;  %v3876_v29 = vand.u32 4294901760, %v3431_v7  ;;  %v1260_v56 = vand.u32 4294901760, %v1259_v43 }
  0xdd   : > { %1053 = vmatpush1.msra.mxu0 %v3397_v13  ;;  %1225 = vmatpush1.msra.mxu1 %v1224_v34  ;;  %v1277_v34 = vsub.f32 %v3458_v26, %v3811_v44  ;;  %v1266_v45 = vand.u32 4294901760, %v1265_v18 }
  0xde   : > { %1055 = vmatprep.subr.mxu0 %v3423_v25  ;;  %1231 = vmatprep.subr.mxu1 %v1230_v3  ;;  %v1271_v57 = vsub.f32 %v3431_v7, %v3876_v29  ;;  %v3877_v3 = vand.u32 4294901760, %v3462_v15  ;;  %v3878_v29 = vmov 0.0  }
  0xdf   : > { %1057 = vmatpush1.msra.mxu0 %v3433_v0  ;;  %1237 = vmatpush1.msra.mxu1 %v1236_v48  ;;  %v1289_v48 = vsub.f32 %v3474_v19, %v3813_v51  ;;  %v1278_v43 = vand.u32 4294901760, %v1277_v34  ;;  %v3882_v34 = vld [vmem:[#allocation33_spill] sm:$0xff]  ;;  %v3894_v51 = vld [vmem:[#allocation34_spill] sm:$0xff] }
  0xe0   : > { %1059 = vmatprep.subr.mxu0 %v3440_v20  ;;  %1243 = vmatprep.subr.mxu1 %v1242_v17  ;;  %v1283_v42 = vsub.f32 %v3462_v15, %v3877_v3  ;;  %v1272_v44 = vand.u32 4294901760, %v1271_v57  ;;  %v1295_v17 = vsub.f32 %v3478_v54, %v3812_v32  ;;  %v3881_v57 = vld [vmem:[#allocation20_spill] sm:$0xff]  ;;  %v3884_v3 = vld [vmem:[#allocation22_spill] sm:$0xff]  ;;  %v3893_v32 = vld [vmem:[#allocation29_spill] sm:$0xff] }
  0xe1   : > { %1061 = vmatpush1.msra.mxu0 %v3450_v63  ;;  %1249 = vmatpush1.msra.mxu1 %v1248_v36  ;;  %v1290_v18 = vand.u32 4294901760, %v1289_v48  ;;  %v3887_v48 = vld [vmem:[#allocation23_spill] sm:$0xff] }
  0xe2   : > { %1094 = vmatprep.mubr.f32.mxu0 %v3878_v29  ;;  %1255 = vmatprep.subr.mxu1 %v1254_v37  ;;  %v1284_v36 = vand.u32 4294901760, %v1283_v42  ;;  %v1296_v37 = vand.u32 4294901760, %v1295_v17  ;;  %v3885_v42 = vld [vmem:[#allocation21_spill] sm:$0xff]  ;;  %v3888_v17 = vld [vmem:[#allocation26_spill] sm:$0xff] }
  0xe3   : > { %1340 = vmatprep.subr.mxu0 %v3120_v24  ;;  %1100 = vmatmul.mubr.f32.vlgmr.msra.gmra.mxu0 %v2974_v14  ;;  %v3879_v14 = vld [vmem:[#allocation18_spill] sm:$0xff] }
  0xe4   : > { %1261 = vmatpush1.msra.mxu1 %v1260_v56  ;;  %1343 = vmatpush1.msra.mxu0 %v3115_v21  ;;  %v3883_v56 = vld [vmem:[#allocation19_spill] sm:$0xff] }
  0xe5   : > { %1267 = vmatprep.subr.mxu1 %v1266_v45  ;;  %1346 = vmatprep.subr.mxu0 %v3144_v46  ;;  %v3886_v45 = vld [vmem:[#allocation24_spill] sm:$0xff] }
  0xe6   : > { %1273 = vmatpush1.msra.mxu1 %v1272_v44  ;;  %1349 = vmatpush1.msra.mxu0 %v3125_v12  ;;  %v3880_v44 = vld [vmem:[#allocation32_spill] sm:$0xff] }
  0xe7   : > { %1279 = vmatprep.subr.mxu1 %v1278_v43  ;;  %1352 = vmatprep.subr.mxu0 %v3152_v28  ;;  %v3889_v43 = vld [vmem:[#allocation25_spill] sm:$0xff] }
  0xe8   : > { %1285 = vmatpush1.msra.mxu1 %v1284_v36  ;;  %1355 = vmatpush1.msra.mxu0 %v3158_v61  ;;  %v3890_v36 = vld [vmem:[#allocation27_spill] sm:$0xff] }
  0xe9   : > { %1291 = vmatprep.subr.mxu1 %v1290_v18  ;;  %1358 = vmatprep.subr.mxu0 %v3196_v58  ;;  %v3891_v18 = vld [vmem:[#allocation28_spill] sm:$0xff] }
  0xea   : > { %1297 = vmatpush1.msra.mxu1 %v1296_v37  ;;  %1330 = vmatprep.mubr.f32.mxu1 %v3878_v29  ;;  %v3892_v37 = vld [vmem:[#allocation31_spill] sm:$0xff] }
  0xeb   : > { %1361 = vmatpush1.msra.mxu0 %v3165_v8  ;;  %1332 = vmatmul.mubr.f32.vlgmr.msra.gmra.mxu1 %v2891_v62  ;;  %v3895_v62 = vld [vmem:[#allocation30_spill] sm:$0xff] }
  0xec   : > { %1364 = vmatprep.subr.mxu0 %v3217_v39  ;;  %1476 = vmatprep.subr.mxu1 %v3098_v6 }
  0xed   : > { %1367 = vmatpush1.msra.mxu0 %v3203_v60  ;;  %1478 = vmatpush1.msra.mxu1 %v3100_v16 }
  0xee   : > { %1370 = vmatprep.subr.mxu0 %v3229_v4  ;;  %1480 = vmatprep.subr.mxu1 %v3117_v22 }
  0xef   : > { %1373 = vmatpush1.msra.mxu0 %v3211_v33  ;;  %1482 = vmatpush1.msra.mxu1 %v3104_v10 }
  0xf0   : > { %1376 = vmatprep.subr.mxu0 %v3266_v2  ;;  %1484 = vmatprep.subr.mxu1 %v3127_v27 }
  0xf1   : > { %1379 = vmatpush1.msra.mxu0 %v3245_v59  ;;  %1486 = vmatpush1.msra.mxu1 %v3879_v14 }
  0xf2   : > { %1382 = vmatprep.subr.mxu0 %v3880_v44  ;;  %1488 = vmatprep.subr.mxu1 %v3881_v57 }
  0xf3   : > { %1385 = vmatpush1.msra.mxu0 %v3882_v34  ;;  %1490 = vmatpush1.msra.mxu1 %v3883_v56 }
  0xf4   : > { %1388 = vmatprep.subr.mxu0 %v3336_v11  ;;  %1492 = vmatprep.subr.mxu1 %v3884_v3 }
  0xf5   : > { %1391 = vmatpush1.msra.mxu0 %v3311_v23  ;;  %1494 = vmatpush1.msra.mxu1 %v3885_v42 }
  0xf6   : > { %1394 = vmatprep.subr.mxu0 %v3357_v5  ;;  %1496 = vmatprep.subr.mxu1 %v3886_v45 }
  0xf7   : > { %1397 = vmatpush1.msra.mxu0 %v3322_v47  ;;  %1498 = vmatpush1.msra.mxu1 %v3887_v48 }
  0xf8   : > { %1400 = vmatprep.subr.mxu0 %v3381_v31  ;;  %1500 = vmatprep.subr.mxu1 %v3888_v17 }
  0xf9   : > { %1403 = vmatpush1.msra.mxu0 %v3385_v9  ;;  %1502 = vmatpush1.msra.mxu1 %v3889_v43 }
  0xfa   : > { %1406 = vmatprep.subr.mxu0 %v3400_v1  ;;  %1504 = vmatprep.subr.mxu1 %v3890_v36 }
  0xfb   : > { %1409 = vmatpush1.msra.mxu0 %v3388_v52  ;;  %1506 = vmatpush1.msra.mxu1 %v3891_v18  ;;  %v3896_v52 = vld [vmem:[#allocation35_spill] sm:$0xff] }
  0xfc   : > { %1412 = vmatprep.subr.mxu0 %v3417_v30  ;;  %1508 = vmatprep.subr.mxu1 %v3892_v37 }
  0xfd   : > { %1415 = vmatpush1.msra.mxu0 %v3405_v35  ;;  %1510 = vmatpush1.msra.mxu1 %v3893_v32 }
  0xfe   : > { %1418 = vmatprep.subr.mxu0 %v3444_v40  ;;  %1512 = vmatprep.subr.mxu1 %v3894_v51 }
  0xff   : > { %1421 = vmatpush1.msra.mxu0 %v3431_v7  ;;  %1514 = vmatpush1.msra.mxu1 %v3895_v62  ;;  %v3897_v7 = vld [vmem:[#allocation16_spill] sm:$0xff] }
 0x100   : > { %1424 = vmatprep.subr.mxu0 %v3458_v26  ;;  %1516 = vmatprep.subr.mxu1 %v3896_v52  ;;  %v3898_v52 = vand.u32 4294901760, %v3120_v24  ;;  %v3902_v24 = vand.u32 4294901760, %v3152_v28  ;;  %v3907_v28 = vand.u32 4294901760, %v3217_v39  ;;  %v3911_v39 = vand.u32 4294901760, %v3266_v2 }
 0x101   : > { %1427 = vmatpush1.msra.mxu0 %v3462_v15  ;;  %1518 = vmatpush1.msra.mxu1 %v3342_v53  ;;  %v3899_v53 = vand.u32 4294901760, %v3115_v21  ;;  %v3903_v21 = vand.u32 4294901760, %v3158_v61  ;;  %v3908_v61 = vand.u32 4294901760, %v3203_v60  ;;  %v3917_v60 = vand.u32 4294901760, %v3357_v5 }
 0x102   : > { %1430 = vmatprep.subr.mxu0 %v3474_v19  ;;  %1520 = vmatprep.subr.mxu1 %v3354_v38  ;;  %v3918_v2 = vand.u32 4294901760, %v3322_v47 }
 0x103   : > { %1433 = vmatpush1.msra.mxu0 %v3478_v54  ;;  %1466 = vmatprep.mubr.f32.mxu0 %v3878_v29  ;;  %v3900_v54 = vand.u32 4294901760, %v3144_v46  ;;  %v3904_v46 = vand.u32 4294901760, %v3196_v58  ;;  %v3909_v58 = vand.u32 4294901760, %v3229_v4  ;;  %v3920_v4 = vand.u32 4294901760, %v3385_v9 }
 0x104   : > { %1522 = vmatpush1.msra.mxu1 %v3344_v41  ;;  %1469 = vmatmul.mubr.f32.vlgmr.msra.gmra.mxu0 %v3897_v7  ;;  %v3901_v41 = vand.u32 4294901760, %v3125_v12  ;;  %v3905_v12 = vand.u32 4294901760, %v3165_v8  ;;  %v3910_v8 = vand.u32 4294901760, %v3211_v33  ;;  %v3919_v33 = vand.u32 4294901760, %v3381_v31  ;;  %v3932_v7 = vld [vmem:[#allocation36_spill] sm:$0xff] }
 0x105   : > { %1524 = vmatprep.subr.mxu1 %v3377_v55  ;;  %1584 = vmatprep.subr.mxu0 %v3898_v52  ;;  %v3924_v31 = vand.u32 4294901760, %v3417_v30  ;;  %v3929_v9 = vand.u32 4294901760, %v3458_v26  ;;  %v3930_v52 = vld [vmem:[#allocation35_spill] sm:$0xff]  ;;  %v3933_v30 = vand.u32 4294901760, %v3474_v19 }
 0x106   : > { %1526 = vmatpush1.msra.mxu1 %v3369_v49  ;;  %1588 = vmatpush1.msra.mxu0 %v3899_v53  ;;  %v3906_v53 = vld [vmem:[#allocation17_spill] sm:$0xff]  ;;  %v3937_v26 = vld [vmem:[#allocation15_spill] sm:$0xff] }
 0x107   : > { %1528 = vmatprep.subr.mxu1 %v3407_v50  ;;  %1592 = vmatprep.subr.mxu0 %v3900_v54 }
 0x108   : > { %1530 = vmatpush1.msra.mxu1 %v3397_v13  ;;  %1596 = vmatpush1.msra.mxu0 %v3901_v41  ;;  %v3927_v41 = vld [vmem:[#allocation39_spill] sm:$0xff] }
 0x109   : > { %1532 = vmatprep.subr.mxu1 %v3423_v25  ;;  %1600 = vmatprep.subr.mxu0 %v3902_v24  ;;  %v3928_v5 = vand.u32 4294901760, %v3927_v41 }
 0x10a   : > { %1534 = vmatpush1.msra.mxu1 %v3433_v0  ;;  %1604 = vmatpush1.msra.mxu0 %v3903_v21 }
 0x10b   : > { %1536 = vmatprep.subr.mxu1 %v3440_v20  ;;  %1608 = vmatprep.subr.mxu0 %v3904_v46 }
 0x10c   : > { %1538 = vmatpush1.msra.mxu1 %v3450_v63  ;;  %1571 = vmatprep.mubr.f32.mxu1 %v3878_v29 }
 0x10d   : > { %1612 = vmatpush1.msra.mxu0 %v3905_v12  ;;  %1575 = vmatmul.mubr.f32.vlgmr.msra.gmra.mxu1 %v3906_v53 }
 0x10e   : > { %1616 = vmatprep.subr.mxu0 %v3907_v28  ;;  %1750 = vmatprep.subr.mxu1 %v3098_v6  ;;  %v3912_v6 = vand.u32 4294901760, %v3245_v59  ;;  %v3921_v59 = vand.u32 4294901760, %v3400_v1  ;;  %v3926_v1 = vand.u32 4294901760, %v3444_v40  ;;  %v3934_v40 = vld [vmem:[#allocation40_spill] sm:$0xff] }
 0x10f   : > { %1620 = vmatpush1.msra.mxu0 %v3908_v61  ;;  %1752 = vmatpush1.msra.mxu1 %v3100_v16  ;;  %v3913_v16 = vand.u32 4294901760, %v3880_v44 }
 0x110   : > { %1624 = vmatprep.subr.mxu0 %v3909_v58  ;;  %1754 = vmatprep.subr.mxu1 %v3117_v22  ;;  %v3914_v22 = vand.u32 4294901760, %v3882_v34 }
 0x111   : > { %1628 = vmatpush1.msra.mxu0 %v3910_v8  ;;  %1756 = vmatpush1.msra.mxu1 %v3104_v10  ;;  %v3915_v10 = vand.u32 4294901760, %v3336_v11  ;;  %v3925_v11 = vand.u32 4294901760, %v3405_v35  ;;  %v3931_v35 = vand.u32 4294901760, %v3462_v15 }
 0x112   : > { %1632 = vmatprep.subr.mxu0 %v3911_v39  ;;  %1758 = vmatprep.subr.mxu1 %v3127_v27  ;;  %v3916_v27 = vand.u32 4294901760, %v3311_v23  ;;  %v3922_v23 = vld [vmem:[#allocation38_spill] sm:$0xff] }
 0x113   : > { %1636 = vmatpush1.msra.mxu0 %v3912_v6  ;;  %1760 = vmatpush1.msra.mxu1 %v3879_v14  ;;  %v3923_v47 = vand.u32 4294901760, %v3922_v23 }
 0x114   : > { %1640 = vmatprep.subr.mxu0 %v3913_v16  ;;  %1762 = vmatprep.subr.mxu1 %v3881_v57 }
 0x115   : > { %1644 = vmatpush1.msra.mxu0 %v3914_v22  ;;  %1764 = vmatpush1.msra.mxu1 %v3883_v56 }
 0x116   : > { %1648 = vmatprep.subr.mxu0 %v3915_v10  ;;  %1766 = vmatprep.subr.mxu1 %v3884_v3 }
 0x117   : > { %1652 = vmatpush1.msra.mxu0 %v3916_v27  ;;  %1768 = vmatpush1.msra.mxu1 %v3885_v42 }
 0x118   : > { %1656 = vmatprep.subr.mxu0 %v3917_v60  ;;  %1770 = vmatprep.subr.mxu1 %v3886_v45 }
 0x119   : > { %1660 = vmatpush1.msra.mxu0 %v3918_v2  ;;  %1772 = vmatpush1.msra.mxu1 %v3887_v48 }
 0x11a   : > { %1664 = vmatprep.subr.mxu0 %v3919_v33  ;;  %1774 = vmatprep.subr.mxu1 %v3888_v17 }
 0x11b   : > { %1668 = vmatpush1.msra.mxu0 %v3920_v4  ;;  %1776 = vmatpush1.msra.mxu1 %v3889_v43 }
 0x11c   : > { %1672 = vmatprep.subr.mxu0 %v3921_v59  ;;  %1778 = vmatprep.subr.mxu1 %v3890_v36 }
 0x11d   : > { %1676 = vmatpush1.msra.mxu0 %v3923_v47  ;;  %1780 = vmatpush1.msra.mxu1 %v3891_v18 }
 0x11e   : > { %1680 = vmatprep.subr.mxu0 %v3924_v31  ;;  %1782 = vmatprep.subr.mxu1 %v3892_v37 }
 0x11f   : > { %1684 = vmatpush1.msra.mxu0 %v3925_v11  ;;  %1784 = vmatpush1.msra.mxu1 %v3893_v32  ;;  %v3935_v32 = vand.u32 4294901760, %v3934_v40 }
 0x120   : > { %1688 = vmatprep.subr.mxu0 %v3926_v1  ;;  %1786 = vmatprep.subr.mxu1 %v3894_v51 }
 0x121   : > { %1692 = vmatpush1.msra.mxu0 %v3928_v5  ;;  %1788 = vmatpush1.msra.mxu1 %v3895_v62  ;;  %v3936_v62 = vld [vmem:[#allocation37_spill] sm:$0xff] }
 0x122   : > { %1696 = vmatprep.subr.mxu0 %v3929_v9  ;;  %1790 = vmatprep.subr.mxu1 %v3930_v52 }
 0x123   : > { %1700 = vmatpush1.msra.mxu0 %v3931_v35  ;;  %1792 = vmatpush1.msra.mxu1 %v3932_v7 }
 0x124   : > { %1704 = vmatprep.subr.mxu0 %v3933_v30  ;;  %1794 = vmatprep.subr.mxu1 %v3354_v38 }
 0x125   : > { %1708 = vmatpush1.msra.mxu0 %v3935_v32  ;;  %1741 = vmatprep.mubr.f32.mxu0 %v3878_v29 }
 0x126   : > { %1796 = vmatpush1.msra.mxu1 %v3936_v62  ;;  %1743 = vmatmul.mubr.f32.vlgmr.msra.gmra.mxu0 %v3937_v26 }
 0x127   : > { %1798 = vmatprep.subr.mxu1 %v3377_v55  ;;  %1845 = vmatprep.mubr.f32.mxu1 %v3878_v29 }
 0x128   : > { %1800 = vmatpush1.msra.mxu1 %v3369_v49 }
 0x129   : > { %1802 = vmatprep.subr.mxu1 %v3407_v50 }
 0x12a   : > { %1804 = vmatpush1.msra.mxu1 %v3397_v13 }
 0x12b   : > { %1806 = vmatprep.subr.mxu1 %v3423_v25 }
 0x12c   : > { %1808 = vmatpush1.msra.mxu1 %v3433_v0 }
 0x12d   : > { %1810 = vmatprep.subr.mxu1 %v3440_v20 }
 0x12e   : > { %1812 = vmatpush1.msra.mxu1 %v3450_v63 }
 0x12f   : > { %1847 = vmatmul.mubr.f32.vlgmr.msra.gmra.mxu1 %v3937_v26 }
 0x13e   : > { %v411_v38 = vpop.f32.mrf.mxu0 }
 0x140   : > { %v2166_v55 = vpop.f32.mrf.mxu0 }
 0x145   : > { %v562_v15 = vpop.f32.mrf.mxu1 }
 0x146   : > { %v563_v51 = vadd.f32 %v562_v15, %v411_v38 }
 0x147   : > { %v2201_v49 = vpop.f32.mrf.mxu1 }
 0x15e   : > { %v666_v19 = vpop.f32.mrf.mxu0 }
 0x15f   : > { %v667_v20 = vadd.f32 %v666_v19, %v563_v51 }
 0x160   : > { %v2236_v50 = vpop.f32.mrf.mxu0 }
 0x167   : > { %v755_v54 = vpop.f32.mrf.mxu1 }
 0x168   : > { %v756_v29 = vadd.f32 %v755_v54, %v667_v20 }
 0x169   : > { %v2271_v13 = vpop.f32.mrf.mxu1 }
 0x180   : > { %v874_v25 = vpop.f32.mrf.mxu0 }
 0x181   : > { %v875_v63 = vadd.f32 %v874_v25, %v756_v29 }
 0x182   : > { %v2306_v0 = vpop.f32.mrf.mxu0 }
 0x189   : > { %v961_v14 = vpop.f32.mrf.mxu1 }
 0x18a   : > { %v962_v44 = vadd.f32 %v961_v14, %v875_v63 }
 0x18b   : > { %v2341_v57 = vpop.f32.mrf.mxu1 }
 0x18c   : > { %965 = vst [vmem:[%s299_s27] sm:$0xff] %v962_v44 }
 0x18d   : > { %2513 = shalt.err (!%p2510_p9)
}
 0x18e   : > { %s2514_s9 = scalar_lea.hbm %s3694_s15, 128  ;;  %s2518_s17 = scalar_lea.hbm %s3754_s5, 256 }
 0x18f   : > { %p2515_p13 = scmp.ne.s32.totalorder %s3694_s15, %s2514_s9  ;;  %p2519_p4 = scmp.lt.s32.totalorder %s3694_s15, %s3754_s5 }
 0x190   : > { %p2520_p8 = scmp.lt.s32.totalorder %s2518_s17, %s2514_s9 }
 0x191   : > { %p2516_p5 = pnand %p2515_p13, %p3938_p0 }
 0x192   : > { %p2521_p7 = por %p2520_p8, %p2519_p4 }
 0x193   : > { %p2517_p10 = pneg %p2516_p5 }
 0x195   : > { %p2522_p11 = pnand %p2521_p7, %p2517_p10 }
 0x197   : > { %2525 = shalt.err (!%p2522_p11)
}
 0x198   : > { %2352 = dma.vmem_to_hbm [thread:$0]  (%p3938_p0), %s1875_s11, 128, %s3694_s15, %s1856_s20  }
 0x199   : > { %s2021_s27 = sshll.u32 %s2764_s12, 4  ;;  %s2029_s11 = sshll.u32 %s2667_s23, 8 }
 0x19a   : > { %s306_s13 = scalar_lea.vmem [#allocation9], %s2021_s27  ;;  %s1886_s24 = scalar_lea.hbm %s3755_s6, %s2029_s11 }
 0x19b   : > { %s1888_s14 = sshll.u32 %s306_s13, 4  ;;  %s1861_s7 = scalar_lea.sflag [#allocation10], %s2764_s12  ;;  %s1889_s14 = int_to_ptr.vmem [resolvable:$true] %s1888_s14 }
 0x19c   : > { %s2526_s8 = scalar_lea.vmem %s1889_s14, 256  ;;  %s2610_s23 = smov [#allocation9]  }
 0x19d   : > { %p2527_p1 = scmp.ne.s32.totalorder %s1889_s14, %s2526_s8  ;;  %s2530_s30 = sshll.u32 %s2610_s23, 4  ;;  %s2531_s30 = int_to_ptr.vmem [resolvable:$false] %s2530_s30 }
 0x19e   : > { %s2532_s9 = scalar_lea.vmem %s2531_s30, 512  ;;  %p2533_p12 = scmp.lt.s32.totalorder %s1889_s14, %s2531_s30 }
 0x19f   : > { %p2528_p2 = pnand %p2527_p1, %p3938_p0  ;;  %p2534_p3 = scmp.lt.s32.totalorder %s2532_s9, %s2526_s8 }
 0x1a1   : > { %p2529_p6 = pneg %p2528_p2  ;;  %p2535_p9 = por %p2534_p3, %p2533_p12 }
 0x1a3   : > { %v1101_v34 = vpop.f32.mrf.mxu0  ;;  %p2536_p13 = pnand %p2535_p9, %p2529_p6 }
 0x1a5   : > { %v1103_v56 = vpop.f32.mrf.mxu0 }
 0x1ab   : > { %v1333_v3 = vpop.f32.mrf.mxu1 }
 0x1ac   : > { %v1334_v43 = vadd.f32 %v1333_v3, %v1101_v34 }
 0x1ad   : > { %v1335_v45 = vpop.f32.mrf.mxu1 }
 0x1ae   : > { %v1336_v18 = vadd.f32 %v1335_v45, %v1103_v56 }
 0x1c4   : > { %v1470_v42 = vpop.f32.mrf.mxu0 }
 0x1c5   : > { %v1471_v37 = vadd.f32 %v1470_v42, %v1334_v43 }
 0x1c6   : > { %v1472_v48 = vpop.f32.mrf.mxu0 }
 0x1c7   : > { %v1473_v21 = vadd.f32 %v1472_v48, %v1336_v18 }
 0x1cd   : > { %v1576_v17 = vpop.f32.mrf.mxu1 }
 0x1ce   : > { %v1577_v46 = vadd.f32 %v1576_v17, %v1471_v37 }
 0x1cf   : > { %v1578_v24 = vpop.f32.mrf.mxu1 }
 0x1d0   : > { %v1579_v53 = vadd.f32 %v1578_v24, %v1473_v21 }
 0x1e6   : > { %v1744_v36 = vpop.f32.mrf.mxu0 }
 0x1e7   : > { %v1745_v28 = vadd.f32 %v1744_v36, %v1577_v46 }
 0x1e8   : > { %v1746_v12 = vpop.f32.mrf.mxu0 }
 0x1e9   : > { %v1747_v58 = vadd.f32 %v1746_v12, %v1579_v53 }
 0x1ef   : > { %v1848_v61 = vpop.f32.mrf.mxu1 }
 0x1f0   : > { %v1849_v8 = vadd.f32 %v1848_v61, %v1745_v28 }
 0x1f1   : > { %v1850_v39 = vpop.f32.mrf.mxu1 }
 0x1f2   : > { %1853 = vst [vmem:[%s306_s13] sm:$0xff] %v1849_v8  ;;  %v1851_v6 = vadd.f32 %v1850_v39, %v1747_v58 }
 0x1f4   : > { %1854 = vst [vmem:[%s306_s13 + $0x8] sm:$0xff] %v1851_v6 }
 0x1f5   : > { %2539 = shalt.err (!%p2536_p13)
}
 0x1f6   : > { %s2540_s10 = scalar_lea.hbm %s1886_s24, 256  ;;  %s2544_s17 = scalar_lea.hbm %s3755_s6, 512 }
 0x1f7   : > { %p2541_p5 = scmp.ne.s32.totalorder %s1886_s24, %s2540_s10  ;;  %p2545_p8 = scmp.lt.s32.totalorder %s1886_s24, %s3755_s6 }
 0x1f8   : > { %p2546_p7 = scmp.lt.s32.totalorder %s2544_s17, %s2540_s10 }
 0x1f9   : > { %p2542_p10 = pnand %p2541_p5, %p3938_p0 }
 0x1fa   : > { %p2547_p11 = por %p2546_p7, %p2545_p8 }
 0x1fb   : > { %p2543_p4 = pneg %p2542_p10 }
 0x1fd   : > { %p2548_p1 = pnand %p2547_p11, %p2543_p4 }
 0x1ff   : > { %2551 = shalt.err (!%p2548_p1)
}
 0x200   : > { %2353 = dma.vmem_to_hbm [thread:$0]  (%p3938_p0), %s1889_s14, 256, %s1886_s24, %s1861_s7  }
 0x201 PF: > { %s1900_s27 = sand.u32 1, %s2586_s21   ;;  %p3939_p2 = scmp.ne.s32.totalorder %s3822_s26, 0 }
 0x202   : > { %p3940_p6 = scmp.ge.s32.totalorder %s2598_s4, 2  ;;  %s1901_s11 = scalar_lea.sflag [#allocation4], %s1900_s27 }
 0x204   : > { %p2368_p12 = pnand %p3940_p6, %p3939_p2 }
 0x206   : > { %p2369_p3 = pneg %p2368_p12 }
 0x208   : > { %2577 = dma.done.wait (%p2369_p3), %s1901_s11, 128  }
 0x209   : > { %2579 = vsyncadd (%p2369_p3), %s1901_s11, 4294967168  ;;  %s1910_s13 = scalar_lea.sflag [#allocation10], %s1900_s27 }
 0x20a   : > { %2581 = dma.done.wait (%p2369_p3), %s1910_s13, 256  }
 0x20b   : > { %2583 = vsyncadd (%p2369_p3), %s1910_s13, 4294967040  ;;  %p24_p0 = scmp.ge.s32.totalorder %s2718_s19, 4   ;;  %s3941_s21 = smov %s2590_s22 }
 0x20c   : > { %s3942_s22 = smov %s2594_s3  ;;  %s3943_s3 = smov %s2727_s28 }
 0x20d   : > { %s3944_s4 = smov %s2718_s19  ;;  %26 = sbr.rel (!%p24_p0) target bundleno = 8 (0x8), region = 110 }
 0x212   :  { %1915 = vsyncpa [#allocation3], 1 }
 0x213   :  { %1917 = vsyncpa [#allocation3 + $0x1], 1 }
 0x214   :  { %1918 = vsyncpa [#allocation6], 1 }
 0x215   :  { %1919 = vsyncpa [#allocation4], 1 }
 0x216   :  { %1921 = vsyncpa [#allocation4 + $0x1], 1 }
 0x217   :  { %1922 = vsyncpa [#allocation10], 1 }
 0x218   :  { %1924 = vsyncpa [#allocation10 + $0x1], 1 }

</bundles_post_ra>
